<compile_context>
chip_gen: v5e
topology: v5e:2x2
jax: 0.10.0
libtpu: 0.0.40
codegen_flags: <defaults>
</compile_context>

<pallas_src>
import math

import jax
import jax.numpy as jnp
from jax.experimental import pallas as pl
from jax.experimental.pallas import tpu as pltpu


def gru_recurrence_kernel(gx_r_ref, gx_z_ref, gx_n_ref, h0_ref,
                          w_hr_ref, w_hz_ref, w_hn_ref, b_hn_ref,
                          d_ref, hN_ref):
    """One invocation per batch tile: internal time loop, f32 hidden carry."""
    T = d_ref.shape[0]
    mm_dtype = w_hr_ref.dtype

    # Hidden-to-hidden weights stay resident (constant index_map across grid).
    w_hr = w_hr_ref[...]
    w_hz = w_hz_ref[...]
    w_hn = w_hn_ref[...]
    b_hn = b_hn_ref[...]                       # (1, H), f32

    def step(t, h):                            # h: (Bt, H) f32 carry
        hw = h.astype(mm_dtype)                # bf16 on v6e/v7x, f32 otherwise
        gh_r = jnp.dot(hw, w_hr, preferred_element_type=jnp.float32)
        gh_z = jnp.dot(hw, w_hz, preferred_element_type=jnp.float32)
        gh_n = jnp.dot(hw, w_hn, preferred_element_type=jnp.float32) + b_hn
        r = jax.nn.sigmoid(gx_r_ref[t] + gh_r)     # gx_* already include biases
        z = jax.nn.sigmoid(gx_z_ref[t] + gh_z)
        n = jnp.tanh(gx_n_ref[t] + r * gh_n)
        h_new = n + z * (h - n)                # == (1 - z) * n + z * h
        d_ref[t] = h_new.astype(d_ref.dtype)   # contiguous (Bt, H) slab store
        return h_new

    h0 = h0_ref[...].astype(jnp.float32)
    unroll = True if T <= 32 else 8
    hN = jax.lax.fori_loop(0, T, step, h0, unroll=unroll)
    hN_ref[...] = hN.astype(hN_ref.dtype)      # written once, after the loop


def gru_decoder(x, hidden_state, w_ih_t, w_hh_t, b_ih, b_hh, *,
                matmul_dtype=jnp.float32):
    """x: (B, T, 2H), hidden_state: (1, B, H) -> (d: (B, T, H), h: (1, B, H)).

    w_ih_t: (2H, 3H) == torch weight_ih_l0.T (packed gate order [r, z, n])
    w_hh_t: (H, 3H)  == torch weight_hh_l0.T
    b_ih, b_hh: (3H,)
    """
    B, T, twoH = x.shape
    H = hidden_state.shape[-1]
    assert twoH == 2 * H

    md = matmul_dtype

    # ---- hoisted input projection: one large matmul on the MXU (XLA) -------
    proj = jnp.dot(x.reshape(B * T, twoH).astype(md), w_ih_t.astype(md),
                   preferred_element_type=jnp.float32)            # (B*T, 3H) f32
    b_x = b_ih.reshape(3, H).astype(jnp.float32)
    b_h = b_hh.reshape(3, H).astype(jnp.float32)
    b_x = b_x.at[0:2].add(b_h[0:2])       # fold b_hr, b_hz into the r/z biases
    gx = proj.reshape(B, T, 3, H) + b_x                            # (B, T, 3, H)
    gx = jnp.transpose(gx, (2, 1, 0, 3))                           # (3, T, B, H)

    h0 = hidden_state[0].astype(jnp.float32)                       # (B, H)

    # ---- pad batch to a multiple of 8 to fill vreg sublanes ----------------
    B_pad = ((B + 7) // 8) * 8
    if B_pad != B:
        gx = jnp.pad(gx, ((0, 0), (0, 0), (0, B_pad - B), (0, 0)))
        h0 = jnp.pad(h0, ((0, B_pad - B), (0, 0)))

    gx_r, gx_z, gx_n = gx[0], gx[1], gx[2]                         # (T, B_pad, H)

    # per-gate hidden weights (lane-aligned; no in-kernel gate slicing)
    w_hr = w_hh_t[:, 0 * H:1 * H].astype(md)
    w_hz = w_hh_t[:, 1 * H:2 * H].astype(md)
    w_hn = w_hh_t[:, 2 * H:3 * H].astype(md)
    b_hn = b_hh[2 * H:3 * H].reshape(1, H).astype(jnp.float32)

    # Batch tile (multiple of 8); independent tiles shard over a "parallel"
    # grid axis, which lets v7x use both TensorCores when B is large.
    Bt = math.gcd(B_pad, 128)
    nb = B_pad // Bt

    d_tm, hN = pl.pallas_call(
        gru_recurrence_kernel,
        out_shape=(jax.ShapeDtypeStruct((T, B_pad, H), x.dtype),
                   jax.ShapeDtypeStruct((B_pad, H), x.dtype)),
        grid_spec=pltpu.PrefetchScalarGridSpec(
            num_scalar_prefetch=0,
            grid=(nb,),
            in_specs=[
                pl.BlockSpec((T, Bt, H), lambda b: (0, b, 0)),     # gx_r
                pl.BlockSpec((T, Bt, H), lambda b: (0, b, 0)),     # gx_z
                pl.BlockSpec((T, Bt, H), lambda b: (0, b, 0)),     # gx_n
                pl.BlockSpec((Bt, H), lambda b: (b, 0)),           # h0
                pl.BlockSpec((H, H), lambda b: (0, 0)),            # W_hr
                pl.BlockSpec((H, H), lambda b: (0, 0)),            # W_hz
                pl.BlockSpec((H, H), lambda b: (0, 0)),            # W_hn
                pl.BlockSpec((1, H), lambda b: (0, 0)),            # b_hn
            ],
            out_specs=[
                pl.BlockSpec((T, Bt, H), lambda b: (0, b, 0)),     # d (time-major)
                pl.BlockSpec((Bt, H), lambda b: (b, 0)),           # h_N
            ],
        ),
        compiler_params=pltpu.CompilerParams(
            dimension_semantics=("parallel",)),
    )(gx_r, gx_z, gx_n, h0, w_hr, w_hz, w_hn, b_hn)

    d = jnp.transpose(d_tm, (1, 0, 2))[:B]                         # (B, T, H)
    return d.astype(x.dtype), hN[:B][None].astype(hidden_state.dtype)


def gru_ref(x, hidden_state, w_ih_t, w_hh_t, b_ih, b_hh):
    """Pure-JAX reference (matches torch.nn.GRU semantics)."""
    H = hidden_state.shape[-1]

    def step(h, x_t):
        gi = x_t @ w_ih_t + b_ih
        gh = h @ w_hh_t + b_hh
        r = jax.nn.sigmoid(gi[:, :H] + gh[:, :H])
        z = jax.nn.sigmoid(gi[:, H:2 * H] + gh[:, H:2 * H])
        n = jnp.tanh(gi[:, 2 * H:] + r * gh[:, 2 * H:])
        h_new = (1.0 - z) * n + z * h
        return h_new, h_new

    hN, ds = jax.lax.scan(step, hidden_state[0], jnp.transpose(x, (1, 0, 2)))
    return jnp.transpose(ds, (1, 0, 2)), hN[None]


if __name__ == "__main__":
    # Small shapes: hidden_dim H=32 -> input_size 2H=64; batch B=2; seq T=8.
    H, B, T = 32, 2, 8
    key = jax.random.PRNGKey(0)
    kx, kh, k1, k2, k3, k4 = jax.random.split(key, 6)

    # Deterministic init mirroring torch's uniform(-1/sqrt(H), 1/sqrt(H)).
    bound = 1.0 / (H ** 0.5)
    # PyTorch stores weight_ih_l0 as (3H, 2H); we keep the transposed layout.
    w_ih_t = jax.random.uniform(k1, (2 * H, 3 * H), jnp.float32, -bound, bound)
    w_hh_t = jax.random.uniform(k2, (H, 3 * H), jnp.float32, -bound, bound)
    b_ih = jax.random.uniform(k3, (3 * H,), jnp.float32, -bound, bound)
    b_hh = jax.random.uniform(k4, (3 * H,), jnp.float32, -bound, bound)

    x = jax.random.normal(kx, (B, T, 2 * H), jnp.float32)
    hidden_state = jax.random.normal(kh, (1, B, H), jnp.float32)

    d_ref, hN_ref = gru_ref(x, hidden_state, w_ih_t, w_hh_t, b_ih, b_hh)

    # f32 path (exact module semantics).
    d, hN = gru_decoder(x, hidden_state, w_ih_t, w_hh_t, b_ih, b_hh)
    jax.block_until_ready((d, hN))
    assert d.shape == (B, T, H) and hN.shape == (1, B, H)
    assert jnp.allclose(d, d_ref, atol=1e-4, rtol=1e-4)
    assert jnp.allclose(hN, hN_ref, atol=1e-4, rtol=1e-4)

    # bf16 MXU path (recommended on v6e/v7x): looser tolerance, f32 gate math.
    d16, hN16 = gru_decoder(x, hidden_state, w_ih_t, w_hh_t, b_ih, b_hh,
                            matmul_dtype=jnp.bfloat16)
    jax.block_until_ready((d16, hN16))
    assert jnp.allclose(d16, d_ref, atol=1e-1, rtol=1e-1)
    assert jnp.allclose(hN16, hN_ref, atol=1e-1, rtol=1e-1)

    print("KERNEL_OK")
</pallas_src>

<mosaic_0001>
module attributes {stable_mosaic.version = 11 : i64} {
  func.func @gru_recurrence_kernel(%arg0: i32, %arg1: memref<8x8x32xf32, #tpu.memory_space<vmem>>, %arg2: memref<8x8x32xf32, #tpu.memory_space<vmem>>, %arg3: memref<8x8x32xf32, #tpu.memory_space<vmem>>, %arg4: memref<8x32xf32, #tpu.memory_space<vmem>>, %arg5: memref<32x32xf32, #tpu.memory_space<vmem>>, %arg6: memref<32x32xf32, #tpu.memory_space<vmem>>, %arg7: memref<32x32xf32, #tpu.memory_space<vmem>>, %arg8: memref<1x32xf32, #tpu.memory_space<vmem>>, %arg9: memref<8x8x32xf32, #tpu.memory_space<vmem>>, %arg10: memref<8x32xf32, #tpu.memory_space<vmem>>) attributes {dimension_semantics = [#tpu.dimension_semantics<parallel>], iteration_bounds = array<i64: 1>, scalar_prefetch = 0 : i64, scratch_operands = 0 : i64, tpu.core_type = #tpu.core_type<tc>, window_params = [{transform_indices = @transform_0, window_bounds = array<i64: 8, 8, 32>}, {transform_indices = @transform_1, window_bounds = array<i64: 8, 8, 32>}, {transform_indices = @transform_2, window_bounds = array<i64: 8, 8, 32>}, {transform_indices = @transform_3, window_bounds = array<i64: 8, 32>}, {pipeline_mode = #tpu.pipeline_mode<synchronous>, transform_indices = @transform_4, window_bounds = array<i64: 32, 32>}, {pipeline_mode = #tpu.pipeline_mode<synchronous>, transform_indices = @transform_5, window_bounds = array<i64: 32, 32>}, {pipeline_mode = #tpu.pipeline_mode<synchronous>, transform_indices = @transform_6, window_bounds = array<i64: 32, 32>}, {pipeline_mode = #tpu.pipeline_mode<synchronous>, transform_indices = @transform_7, window_bounds = array<i64: 1, 32>}, {transform_indices = @transform_8, window_bounds = array<i64: 8, 8, 32>}, {transform_indices = @transform_9, window_bounds = array<i64: 8, 32>}]} {
    %c0 = arith.constant 0 : index
    %c0_0 = arith.constant 0 : index
    %0 = vector.load %arg5[%c0, %c0_0] : memref<32x32xf32, #tpu.memory_space<vmem>>, vector<32x32xf32>
    %c0_1 = arith.constant 0 : index
    %c0_2 = arith.constant 0 : index
    %1 = vector.load %arg6[%c0_1, %c0_2] : memref<32x32xf32, #tpu.memory_space<vmem>>, vector<32x32xf32>
    %c0_3 = arith.constant 0 : index
    %c0_4 = arith.constant 0 : index
    %2 = vector.load %arg7[%c0_3, %c0_4] : memref<32x32xf32, #tpu.memory_space<vmem>>, vector<32x32xf32>
    %c0_5 = arith.constant 0 : index
    %c0_6 = arith.constant 0 : index
    %3 = vector.load %arg8[%c0_5, %c0_6] : memref<1x32xf32, #tpu.memory_space<vmem>>, vector<1x32xf32>
    %c0_7 = arith.constant 0 : index
    %c0_8 = arith.constant 0 : index
    %4 = vector.load %arg4[%c0_7, %c0_8] : memref<8x32xf32, #tpu.memory_space<vmem>>, vector<8x32xf32>
    %c0_i32 = arith.constant 0 : i32
    %cst = arith.constant dense<0.000000e+00> : vector<8x32xf32>
    %5 = tpu.matmul %4, %0, %cst {dimension_numbers = #tpu.dot_dimension_numbers<[1], [0], [0], [1], [0, 0, 1, 1], [], []>} : vector<8x32xf32>, vector<32x32xf32>, vector<8x32xf32> -> vector<8x32xf32>
    %cst_9 = arith.constant dense<0.000000e+00> : vector<8x32xf32>
    %6 = tpu.matmul %4, %1, %cst_9 {dimension_numbers = #tpu.dot_dimension_numbers<[1], [0], [0], [1], [0, 0, 1, 1], [], []>} : vector<8x32xf32>, vector<32x32xf32>, vector<8x32xf32> -> vector<8x32xf32>
    %cst_10 = arith.constant dense<0.000000e+00> : vector<8x32xf32>
    %7 = tpu.matmul %4, %2, %cst_10 {dimension_numbers = #tpu.dot_dimension_numbers<[1], [0], [0], [1], [0, 0, 1, 1], [], []>} : vector<8x32xf32>, vector<32x32xf32>, vector<8x32xf32> -> vector<8x32xf32>
    %8 = vector.broadcast %3 : vector<1x32xf32> to vector<8x32xf32>
    %9 = arith.addf %7, %8 : vector<8x32xf32>
    %10 = arith.index_cast %c0_i32 : i32 to index
    %c0_11 = arith.constant 0 : index
    %c0_12 = arith.constant 0 : index
    %11 = vector.load %arg1[%10, %c0_11, %c0_12] : memref<8x8x32xf32, #tpu.memory_space<vmem>>, vector<1x8x32xf32>
    %12 = vector.shape_cast %11 : vector<1x8x32xf32> to vector<8x32xf32>
    %13 = arith.addf %12, %5 : vector<8x32xf32>
    %14 = arith.negf %13 : vector<8x32xf32>
    %15 = math.exp %14 : vector<8x32xf32>
    %cst_13 = arith.constant 1.000000e+00 : f32
    %16 = vector.broadcast %cst_13 : f32 to vector<8x32xf32>
    %17 = arith.addf %16, %15 : vector<8x32xf32>
    %18 = arith.divf %16, %17 : vector<8x32xf32>
    %19 = arith.index_cast %c0_i32 : i32 to index
    %c0_14 = arith.constant 0 : index
    %c0_15 = arith.constant 0 : index
    %20 = vector.load %arg2[%19, %c0_14, %c0_15] : memref<8x8x32xf32, #tpu.memory_space<vmem>>, vector<1x8x32xf32>
    %21 = vector.shape_cast %20 : vector<1x8x32xf32> to vector<8x32xf32>
    %22 = arith.addf %21, %6 : vector<8x32xf32>
    %23 = arith.negf %22 : vector<8x32xf32>
    %24 = math.exp %23 : vector<8x32xf32>
    %cst_16 = arith.constant 1.000000e+00 : f32
    %25 = vector.broadcast %cst_16 : f32 to vector<8x32xf32>
    %26 = arith.addf %25, %24 : vector<8x32xf32>
    %27 = arith.divf %25, %26 : vector<8x32xf32>
    %28 = arith.index_cast %c0_i32 : i32 to index
    %c0_17 = arith.constant 0 : index
    %c0_18 = arith.constant 0 : index
    %29 = vector.load %arg3[%28, %c0_17, %c0_18] : memref<8x8x32xf32, #tpu.memory_space<vmem>>, vector<1x8x32xf32>
    %30 = vector.shape_cast %29 : vector<1x8x32xf32> to vector<8x32xf32>
    %31 = arith.mulf %18, %9 : vector<8x32xf32>
    %32 = arith.addf %30, %31 : vector<8x32xf32>
    %33 = math.tanh %32 : vector<8x32xf32>
    %34 = arith.subf %4, %33 : vector<8x32xf32>
    %35 = arith.mulf %27, %34 : vector<8x32xf32>
    %36 = arith.addf %33, %35 : vector<8x32xf32>
    %37 = arith.index_cast %c0_i32 : i32 to index
    %c0_19 = arith.constant 0 : index
    %c0_20 = arith.constant 0 : index
    %38 = vector.load %arg9[%37, %c0_19, %c0_20] : memref<8x8x32xf32, #tpu.memory_space<vmem>>, vector<1x8x32xf32>
    %39 = vector.shape_cast %38 : vector<1x8x32xf32> to vector<8x32xf32>
    %40 = vector.shape_cast %36 : vector<8x32xf32> to vector<1x8x32xf32>
    tpu.vector_store %arg9[%37, %c0_19, %c0_20], %40 {strides = array<i32>} : memref<8x8x32xf32, #tpu.memory_space<vmem>>, vector<1x8x32xf32>,
    %c1_i32 = arith.constant 1 : i32
    %cst_21 = arith.constant dense<0.000000e+00> : vector<8x32xf32>
    %41 = tpu.matmul %36, %0, %cst_21 {dimension_numbers = #tpu.dot_dimension_numbers<[1], [0], [0], [1], [0, 0, 1, 1], [], []>} : vector<8x32xf32>, vector<32x32xf32>, vector<8x32xf32> -> vector<8x32xf32>
    %cst_22 = arith.constant dense<0.000000e+00> : vector<8x32xf32>
    %42 = tpu.matmul %36, %1, %cst_22 {dimension_numbers = #tpu.dot_dimension_numbers<[1], [0], [0], [1], [0, 0, 1, 1], [], []>} : vector<8x32xf32>, vector<32x32xf32>, vector<8x32xf32> -> vector<8x32xf32>
    %cst_23 = arith.constant dense<0.000000e+00> : vector<8x32xf32>
    %43 = tpu.matmul %36, %2, %cst_23 {dimension_numbers = #tpu.dot_dimension_numbers<[1], [0], [0], [1], [0, 0, 1, 1], [], []>} : vector<8x32xf32>, vector<32x32xf32>, vector<8x32xf32> -> vector<8x32xf32>
    %44 = vector.broadcast %3 : vector<1x32xf32> to vector<8x32xf32>
    %45 = arith.addf %43, %44 : vector<8x32xf32>
    %46 = arith.index_cast %c1_i32 : i32 to index
    %c0_24 = arith.constant 0 : index
    %c0_25 = arith.constant 0 : index
    %47 = vector.load %arg1[%46, %c0_24, %c0_25] : memref<8x8x32xf32, #tpu.memory_space<vmem>>, vector<1x8x32xf32>
    %48 = vector.shape_cast %47 : vector<1x8x32xf32> to vector<8x32xf32>
    %49 = arith.addf %48, %41 : vector<8x32xf32>
    %50 = arith.negf %49 : vector<8x32xf32>
    %51 = math.exp %50 : vector<8x32xf32>
    %cst_26 = arith.constant 1.000000e+00 : f32
    %52 = vector.broadcast %cst_26 : f32 to vector<8x32xf32>
    %53 = arith.addf %52, %51 : vector<8x32xf32>
    %54 = arith.divf %52, %53 : vector<8x32xf32>
    %55 = arith.index_cast %c1_i32 : i32 to index
    %c0_27 = arith.constant 0 : index
    %c0_28 = arith.constant 0 : index
    %56 = vector.load %arg2[%55, %c0_27, %c0_28] : memref<8x8x32xf32, #tpu.memory_space<vmem>>, vector<1x8x32xf32>
    %57 = vector.shape_cast %56 : vector<1x8x32xf32> to vector<8x32xf32>
    %58 = arith.addf %57, %42 : vector<8x32xf32>
    %59 = arith.negf %58 : vector<8x32xf32>
    %60 = math.exp %59 : vector<8x32xf32>
    %cst_29 = arith.constant 1.000000e+00 : f32
    %61 = vector.broadcast %cst_29 : f32 to vector<8x32xf32>
    %62 = arith.addf %61, %60 : vector<8x32xf32>
    %63 = arith.divf %61, %62 : vector<8x32xf32>
    %64 = arith.index_cast %c1_i32 : i32 to index
    %c0_30 = arith.constant 0 : index
    %c0_31 = arith.constant 0 : index
    %65 = vector.load %arg3[%64, %c0_30, %c0_31] : memref<8x8x32xf32, #tpu.memory_space<vmem>>, vector<1x8x32xf32>
    %66 = vector.shape_cast %65 : vector<1x8x32xf32> to vector<8x32xf32>
    %67 = arith.mulf %54, %45 : vector<8x32xf32>
    %68 = arith.addf %66, %67 : vector<8x32xf32>
    %69 = math.tanh %68 : vector<8x32xf32>
    %70 = arith.subf %36, %69 : vector<8x32xf32>
    %71 = arith.mulf %63, %70 : vector<8x32xf32>
    %72 = arith.addf %69, %71 : vector<8x32xf32>
    %73 = arith.index_cast %c1_i32 : i32 to index
    %c0_32 = arith.constant 0 : index
    %c0_33 = arith.constant 0 : index
    %74 = vector.load %arg9[%73, %c0_32, %c0_33] : memref<8x8x32xf32, #tpu.memory_space<vmem>>, vector<1x8x32xf32>
    %75 = vector.shape_cast %74 : vector<1x8x32xf32> to vector<8x32xf32>
    %76 = vector.shape_cast %72 : vector<8x32xf32> to vector<1x8x32xf32>
    tpu.vector_store %arg9[%73, %c0_32, %c0_33], %76 {strides = array<i32>} : memref<8x8x32xf32, #tpu.memory_space<vmem>>, vector<1x8x32xf32>,
    %c2_i32 = arith.constant 2 : i32
    %cst_34 = arith.constant dense<0.000000e+00> : vector<8x32xf32>
    %77 = tpu.matmul %72, %0, %cst_34 {dimension_numbers = #tpu.dot_dimension_numbers<[1], [0], [0], [1], [0, 0, 1, 1], [], []>} : vector<8x32xf32>, vector<32x32xf32>, vector<8x32xf32> -> vector<8x32xf32>
    %cst_35 = arith.constant dense<0.000000e+00> : vector<8x32xf32>
    %78 = tpu.matmul %72, %1, %cst_35 {dimension_numbers = #tpu.dot_dimension_numbers<[1], [0], [0], [1], [0, 0, 1, 1], [], []>} : vector<8x32xf32>, vector<32x32xf32>, vector<8x32xf32> -> vector<8x32xf32>
    %cst_36 = arith.constant dense<0.000000e+00> : vector<8x32xf32>
    %79 = tpu.matmul %72, %2, %cst_36 {dimension_numbers = #tpu.dot_dimension_numbers<[1], [0], [0], [1], [0, 0, 1, 1], [], []>} : vector<8x32xf32>, vector<32x32xf32>, vector<8x32xf32> -> vector<8x32xf32>
    %80 = vector.broadcast %3 : vector<1x32xf32> to vector<8x32xf32>
    %81 = arith.addf %79, %80 : vector<8x32xf32>
    %82 = arith.index_cast %c2_i32 : i32 to index
    %c0_37 = arith.constant 0 : index
    %c0_38 = arith.constant 0 : index
    %83 = vector.load %arg1[%82, %c0_37, %c0_38] : memref<8x8x32xf32, #tpu.memory_space<vmem>>, vector<1x8x32xf32>
    %84 = vector.shape_cast %83 : vector<1x8x32xf32> to vector<8x32xf32>
    %85 = arith.addf %84, %77 : vector<8x32xf32>
    %86 = arith.negf %85 : vector<8x32xf32>
    %87 = math.exp %86 : vector<8x32xf32>
    %cst_39 = arith.constant 1.000000e+00 : f32
    %88 = vector.broadcast %cst_39 : f32 to vector<8x32xf32>
    %89 = arith.addf %88, %87 : vector<8x32xf32>
    %90 = arith.divf %88, %89 : vector<8x32xf32>
    %91 = arith.index_cast %c2_i32 : i32 to index
    %c0_40 = arith.constant 0 : index
    %c0_41 = arith.constant 0 : index
    %92 = vector.load %arg2[%91, %c0_40, %c0_41] : memref<8x8x32xf32, #tpu.memory_space<vmem>>, vector<1x8x32xf32>
    %93 = vector.shape_cast %92 : vector<1x8x32xf32> to vector<8x32xf32>
    %94 = arith.addf %93, %78 : vector<8x32xf32>
    %95 = arith.negf %94 : vector<8x32xf32>
    %96 = math.exp %95 : vector<8x32xf32>
    %cst_42 = arith.constant 1.000000e+00 : f32
    %97 = vector.broadcast %cst_42 : f32 to vector<8x32xf32>
    %98 = arith.addf %97, %96 : vector<8x32xf32>
    %99 = arith.divf %97, %98 : vector<8x32xf32>
    %100 = arith.index_cast %c2_i32 : i32 to index
    %c0_43 = arith.constant 0 : index
    %c0_44 = arith.constant 0 : index
    %101 = vector.load %arg3[%100, %c0_43, %c0_44] : memref<8x8x32xf32, #tpu.memory_space<vmem>>, vector<1x8x32xf32>
    %102 = vector.shape_cast %101 : vector<1x8x32xf32> to vector<8x32xf32>
    %103 = arith.mulf %90, %81 : vector<8x32xf32>
    %104 = arith.addf %102, %103 : vector<8x32xf32>
    %105 = math.tanh %104 : vector<8x32xf32>
    %106 = arith.subf %72, %105 : vector<8x32xf32>
    %107 = arith.mulf %99, %106 : vector<8x32xf32>
    %108 = arith.addf %105, %107 : vector<8x32xf32>
    %109 = arith.index_cast %c2_i32 : i32 to index
    %c0_45 = arith.constant 0 : index
    %c0_46 = arith.constant 0 : index
    %110 = vector.load %arg9[%109, %c0_45, %c0_46] : memref<8x8x32xf32, #tpu.memory_space<vmem>>, vector<1x8x32xf32>
    %111 = vector.shape_cast %110 : vector<1x8x32xf32> to vector<8x32xf32>
    %112 = vector.shape_cast %108 : vector<8x32xf32> to vector<1x8x32xf32>
    tpu.vector_store %arg9[%109, %c0_45, %c0_46], %112 {strides = array<i32>} : memref<8x8x32xf32, #tpu.memory_space<vmem>>, vector<1x8x32xf32>,
    %c3_i32 = arith.constant 3 : i32
    %cst_47 = arith.constant dense<0.000000e+00> : vector<8x32xf32>
    %113 = tpu.matmul %108, %0, %cst_47 {dimension_numbers = #tpu.dot_dimension_numbers<[1], [0], [0], [1], [0, 0, 1, 1], [], []>} : vector<8x32xf32>, vector<32x32xf32>, vector<8x32xf32> -> vector<8x32xf32>
    %cst_48 = arith.constant dense<0.000000e+00> : vector<8x32xf32>
    %114 = tpu.matmul %108, %1, %cst_48 {dimension_numbers = #tpu.dot_dimension_numbers<[1], [0], [0], [1], [0, 0, 1, 1], [], []>} : vector<8x32xf32>, vector<32x32xf32>, vector<8x32xf32> -> vector<8x32xf32>
    %cst_49 = arith.constant dense<0.000000e+00> : vector<8x32xf32>
    %115 = tpu.matmul %108, %2, %cst_49 {dimension_numbers = #tpu.dot_dimension_numbers<[1], [0], [0], [1], [0, 0, 1, 1], [], []>} : vector<8x32xf32>, vector<32x32xf32>, vector<8x32xf32> -> vector<8x32xf32>
    %116 = vector.broadcast %3 : vector<1x32xf32> to vector<8x32xf32>
    %117 = arith.addf %115, %116 : vector<8x32xf32>
    %118 = arith.index_cast %c3_i32 : i32 to index
    %c0_50 = arith.constant 0 : index
    %c0_51 = arith.constant 0 : index
    %119 = vector.load %arg1[%118, %c0_50, %c0_51] : memref<8x8x32xf32, #tpu.memory_space<vmem>>, vector<1x8x32xf32>
    %120 = vector.shape_cast %119 : vector<1x8x32xf32> to vector<8x32xf32>
    %121 = arith.addf %120, %113 : vector<8x32xf32>
    %122 = arith.negf %121 : vector<8x32xf32>
    %123 = math.exp %122 : vector<8x32xf32>
    %cst_52 = arith.constant 1.000000e+00 : f32
    %124 = vector.broadcast %cst_52 : f32 to vector<8x32xf32>
    %125 = arith.addf %124, %123 : vector<8x32xf32>
    %126 = arith.divf %124, %125 : vector<8x32xf32>
    %127 = arith.index_cast %c3_i32 : i32 to index
    %c0_53 = arith.constant 0 : index
    %c0_54 = arith.constant 0 : index
    %128 = vector.load %arg2[%127, %c0_53, %c0_54] : memref<8x8x32xf32, #tpu.memory_space<vmem>>, vector<1x8x32xf32>
    %129 = vector.shape_cast %128 : vector<1x8x32xf32> to vector<8x32xf32>
    %130 = arith.addf %129, %114 : vector<8x32xf32>
    %131 = arith.negf %130 : vector<8x32xf32>
    %132 = math.exp %131 : vector<8x32xf32>
    %cst_55 = arith.constant 1.000000e+00 : f32
    %133 = vector.broadcast %cst_55 : f32 to vector<8x32xf32>
    %134 = arith.addf %133, %132 : vector<8x32xf32>
    %135 = arith.divf %133, %134 : vector<8x32xf32>
    %136 = arith.index_cast %c3_i32 : i32 to index
    %c0_56 = arith.constant 0 : index
    %c0_57 = arith.constant 0 : index
    %137 = vector.load %arg3[%136, %c0_56, %c0_57] : memref<8x8x32xf32, #tpu.memory_space<vmem>>, vector<1x8x32xf32>
    %138 = vector.shape_cast %137 : vector<1x8x32xf32> to vector<8x32xf32>
    %139 = arith.mulf %126, %117 : vector<8x32xf32>
    %140 = arith.addf %138, %139 : vector<8x32xf32>
    %141 = math.tanh %140 : vector<8x32xf32>
    %142 = arith.subf %108, %141 : vector<8x32xf32>
    %143 = arith.mulf %135, %142 : vector<8x32xf32>
    %144 = arith.addf %141, %143 : vector<8x32xf32>
    %145 = arith.index_cast %c3_i32 : i32 to index
    %c0_58 = arith.constant 0 : index
    %c0_59 = arith.constant 0 : index
    %146 = vector.load %arg9[%145, %c0_58, %c0_59] : memref<8x8x32xf32, #tpu.memory_space<vmem>>, vector<1x8x32xf32>
    %147 = vector.shape_cast %146 : vector<1x8x32xf32> to vector<8x32xf32>
    %148 = vector.shape_cast %144 : vector<8x32xf32> to vector<1x8x32xf32>
    tpu.vector_store %arg9[%145, %c0_58, %c0_59], %148 {strides = array<i32>} : memref<8x8x32xf32, #tpu.memory_space<vmem>>, vector<1x8x32xf32>,
    %c4_i32 = arith.constant 4 : i32
    %cst_60 = arith.constant dense<0.000000e+00> : vector<8x32xf32>
    %149 = tpu.matmul %144, %0, %cst_60 {dimension_numbers = #tpu.dot_dimension_numbers<[1], [0], [0], [1], [0, 0, 1, 1], [], []>} : vector<8x32xf32>, vector<32x32xf32>, vector<8x32xf32> -> vector<8x32xf32>
    %cst_61 = arith.constant dense<0.000000e+00> : vector<8x32xf32>
    %150 = tpu.matmul %144, %1, %cst_61 {dimension_numbers = #tpu.dot_dimension_numbers<[1], [0], [0], [1], [0, 0, 1, 1], [], []>} : vector<8x32xf32>, vector<32x32xf32>, vector<8x32xf32> -> vector<8x32xf32>
    %cst_62 = arith.constant dense<0.000000e+00> : vector<8x32xf32>
    %151 = tpu.matmul %144, %2, %cst_62 {dimension_numbers = #tpu.dot_dimension_numbers<[1], [0], [0], [1], [0, 0, 1, 1], [], []>} : vector<8x32xf32>, vector<32x32xf32>, vector<8x32xf32> -> vector<8x32xf32>
    %152 = vector.broadcast %3 : vector<1x32xf32> to vector<8x32xf32>
    %153 = arith.addf %151, %152 : vector<8x32xf32>
    %154 = arith.index_cast %c4_i32 : i32 to index
    %c0_63 = arith.constant 0 : index
    %c0_64 = arith.constant 0 : index
    %155 = vector.load %arg1[%154, %c0_63, %c0_64] : memref<8x8x32xf32, #tpu.memory_space<vmem>>, vector<1x8x32xf32>
    %156 = vector.shape_cast %155 : vector<1x8x32xf32> to vector<8x32xf32>
    %157 = arith.addf %156, %149 : vector<8x32xf32>
    %158 = arith.negf %157 : vector<8x32xf32>
    %159 = math.exp %158 : vector<8x32xf32>
    %cst_65 = arith.constant 1.000000e+00 : f32
    %160 = vector.broadcast %cst_65 : f32 to vector<8x32xf32>
    %161 = arith.addf %160, %159 : vector<8x32xf32>
    %162 = arith.divf %160, %161 : vector<8x32xf32>
    %163 = arith.index_cast %c4_i32 : i32 to index
    %c0_66 = arith.constant 0 : index
    %c0_67 = arith.constant 0 : index
    %164 = vector.load %arg2[%163, %c0_66, %c0_67] : memref<8x8x32xf32, #tpu.memory_space<vmem>>, vector<1x8x32xf32>
    %165 = vector.shape_cast %164 : vector<1x8x32xf32> to vector<8x32xf32>
    %166 = arith.addf %165, %150 : vector<8x32xf32>
    %167 = arith.negf %166 : vector<8x32xf32>
    %168 = math.exp %167 : vector<8x32xf32>
    %cst_68 = arith.constant 1.000000e+00 : f32
    %169 = vector.broadcast %cst_68 : f32 to vector<8x32xf32>
    %170 = arith.addf %169, %168 : vector<8x32xf32>
    %171 = arith.divf %169, %170 : vector<8x32xf32>
    %172 = arith.index_cast %c4_i32 : i32 to index
    %c0_69 = arith.constant 0 : index
    %c0_70 = arith.constant 0 : index
    %173 = vector.load %arg3[%172, %c0_69, %c0_70] : memref<8x8x32xf32, #tpu.memory_space<vmem>>, vector<1x8x32xf32>
    %174 = vector.shape_cast %173 : vector<1x8x32xf32> to vector<8x32xf32>
    %175 = arith.mulf %162, %153 : vector<8x32xf32>
    %176 = arith.addf %174, %175 : vector<8x32xf32>
    %177 = math.tanh %176 : vector<8x32xf32>
    %178 = arith.subf %144, %177 : vector<8x32xf32>
    %179 = arith.mulf %171, %178 : vector<8x32xf32>
    %180 = arith.addf %177, %179 : vector<8x32xf32>
    %181 = arith.index_cast %c4_i32 : i32 to index
    %c0_71 = arith.constant 0 : index
    %c0_72 = arith.constant 0 : index
    %182 = vector.load %arg9[%181, %c0_71, %c0_72] : memref<8x8x32xf32, #tpu.memory_space<vmem>>, vector<1x8x32xf32>
    %183 = vector.shape_cast %182 : vector<1x8x32xf32> to vector<8x32xf32>
    %184 = vector.shape_cast %180 : vector<8x32xf32> to vector<1x8x32xf32>
    tpu.vector_store %arg9[%181, %c0_71, %c0_72], %184 {strides = array<i32>} : memref<8x8x32xf32, #tpu.memory_space<vmem>>, vector<1x8x32xf32>,
    %c5_i32 = arith.constant 5 : i32
    %cst_73 = arith.constant dense<0.000000e+00> : vector<8x32xf32>
    %185 = tpu.matmul %180, %0, %cst_73 {dimension_numbers = #tpu.dot_dimension_numbers<[1], [0], [0], [1], [0, 0, 1, 1], [], []>} : vector<8x32xf32>, vector<32x32xf32>, vector<8x32xf32> -> vector<8x32xf32>
    %cst_74 = arith.constant dense<0.000000e+00> : vector<8x32xf32>
    %186 = tpu.matmul %180, %1, %cst_74 {dimension_numbers = #tpu.dot_dimension_numbers<[1], [0], [0], [1], [0, 0, 1, 1], [], []>} : vector<8x32xf32>, vector<32x32xf32>, vector<8x32xf32> -> vector<8x32xf32>
    %cst_75 = arith.constant dense<0.000000e+00> : vector<8x32xf32>
    %187 = tpu.matmul %180, %2, %cst_75 {dimension_numbers = #tpu.dot_dimension_numbers<[1], [0], [0], [1], [0, 0, 1, 1], [], []>} : vector<8x32xf32>, vector<32x32xf32>, vector<8x32xf32> -> vector<8x32xf32>
    %188 = vector.broadcast %3 : vector<1x32xf32> to vector<8x32xf32>
    %189 = arith.addf %187, %188 : vector<8x32xf32>
    %190 = arith.index_cast %c5_i32 : i32 to index
    %c0_76 = arith.constant 0 : index
    %c0_77 = arith.constant 0 : index
    %191 = vector.load %arg1[%190, %c0_76, %c0_77] : memref<8x8x32xf32, #tpu.memory_space<vmem>>, vector<1x8x32xf32>
    %192 = vector.shape_cast %191 : vector<1x8x32xf32> to vector<8x32xf32>
    %193 = arith.addf %192, %185 : vector<8x32xf32>
    %194 = arith.negf %193 : vector<8x32xf32>
    %195 = math.exp %194 : vector<8x32xf32>
    %cst_78 = arith.constant 1.000000e+00 : f32
    %196 = vector.broadcast %cst_78 : f32 to vector<8x32xf32>
    %197 = arith.addf %196, %195 : vector<8x32xf32>
    %198 = arith.divf %196, %197 : vector<8x32xf32>
    %199 = arith.index_cast %c5_i32 : i32 to index
    %c0_79 = arith.constant 0 : index
    %c0_80 = arith.constant 0 : index
    %200 = vector.load %arg2[%199, %c0_79, %c0_80] : memref<8x8x32xf32, #tpu.memory_space<vmem>>, vector<1x8x32xf32>
    %201 = vector.shape_cast %200 : vector<1x8x32xf32> to vector<8x32xf32>
    %202 = arith.addf %201, %186 : vector<8x32xf32>
    %203 = arith.negf %202 : vector<8x32xf32>
    %204 = math.exp %203 : vector<8x32xf32>
    %cst_81 = arith.constant 1.000000e+00 : f32
    %205 = vector.broadcast %cst_81 : f32 to vector<8x32xf32>
    %206 = arith.addf %205, %204 : vector<8x32xf32>
    %207 = arith.divf %205, %206 : vector<8x32xf32>
    %208 = arith.index_cast %c5_i32 : i32 to index
    %c0_82 = arith.constant 0 : index
    %c0_83 = arith.constant 0 : index
    %209 = vector.load %arg3[%208, %c0_82, %c0_83] : memref<8x8x32xf32, #tpu.memory_space<vmem>>, vector<1x8x32xf32>
    %210 = vector.shape_cast %209 : vector<1x8x32xf32> to vector<8x32xf32>
    %211 = arith.mulf %198, %189 : vector<8x32xf32>
    %212 = arith.addf %210, %211 : vector<8x32xf32>
    %213 = math.tanh %212 : vector<8x32xf32>
    %214 = arith.subf %180, %213 : vector<8x32xf32>
    %215 = arith.mulf %207, %214 : vector<8x32xf32>
    %216 = arith.addf %213, %215 : vector<8x32xf32>
    %217 = arith.index_cast %c5_i32 : i32 to index
    %c0_84 = arith.constant 0 : index
    %c0_85 = arith.constant 0 : index
    %218 = vector.load %arg9[%217, %c0_84, %c0_85] : memref<8x8x32xf32, #tpu.memory_space<vmem>>, vector<1x8x32xf32>
    %219 = vector.shape_cast %218 : vector<1x8x32xf32> to vector<8x32xf32>
    %220 = vector.shape_cast %216 : vector<8x32xf32> to vector<1x8x32xf32>
    tpu.vector_store %arg9[%217, %c0_84, %c0_85], %220 {strides = array<i32>} : memref<8x8x32xf32, #tpu.memory_space<vmem>>, vector<1x8x32xf32>,
    %c6_i32 = arith.constant 6 : i32
    %cst_86 = arith.constant dense<0.000000e+00> : vector<8x32xf32>
    %221 = tpu.matmul %216, %0, %cst_86 {dimension_numbers = #tpu.dot_dimension_numbers<[1], [0], [0], [1], [0, 0, 1, 1], [], []>} : vector<8x32xf32>, vector<32x32xf32>, vector<8x32xf32> -> vector<8x32xf32>
    %cst_87 = arith.constant dense<0.000000e+00> : vector<8x32xf32>
    %222 = tpu.matmul %216, %1, %cst_87 {dimension_numbers = #tpu.dot_dimension_numbers<[1], [0], [0], [1], [0, 0, 1, 1], [], []>} : vector<8x32xf32>, vector<32x32xf32>, vector<8x32xf32> -> vector<8x32xf32>
    %cst_88 = arith.constant dense<0.000000e+00> : vector<8x32xf32>
    %223 = tpu.matmul %216, %2, %cst_88 {dimension_numbers = #tpu.dot_dimension_numbers<[1], [0], [0], [1], [0, 0, 1, 1], [], []>} : vector<8x32xf32>, vector<32x32xf32>, vector<8x32xf32> -> vector<8x32xf32>
    %224 = vector.broadcast %3 : vector<1x32xf32> to vector<8x32xf32>
    %225 = arith.addf %223, %224 : vector<8x32xf32>
    %226 = arith.index_cast %c6_i32 : i32 to index
    %c0_89 = arith.constant 0 : index
    %c0_90 = arith.constant 0 : index
    %227 = vector.load %arg1[%226, %c0_89, %c0_90] : memref<8x8x32xf32, #tpu.memory_space<vmem>>, vector<1x8x32xf32>
    %228 = vector.shape_cast %227 : vector<1x8x32xf32> to vector<8x32xf32>
    %229 = arith.addf %228, %221 : vector<8x32xf32>
    %230 = arith.negf %229 : vector<8x32xf32>
    %231 = math.exp %230 : vector<8x32xf32>
    %cst_91 = arith.constant 1.000000e+00 : f32
    %232 = vector.broadcast %cst_91 : f32 to vector<8x32xf32>
    %233 = arith.addf %232, %231 : vector<8x32xf32>
    %234 = arith.divf %232, %233 : vector<8x32xf32>
    %235 = arith.index_cast %c6_i32 : i32 to index
    %c0_92 = arith.constant 0 : index
    %c0_93 = arith.constant 0 : index
    %236 = vector.load %arg2[%235, %c0_92, %c0_93] : memref<8x8x32xf32, #tpu.memory_space<vmem>>, vector<1x8x32xf32>
    %237 = vector.shape_cast %236 : vector<1x8x32xf32> to vector<8x32xf32>
    %238 = arith.addf %237, %222 : vector<8x32xf32>
    %239 = arith.negf %238 : vector<8x32xf32>
    %240 = math.exp %239 : vector<8x32xf32>
    %cst_94 = arith.constant 1.000000e+00 : f32
    %241 = vector.broadcast %cst_94 : f32 to vector<8x32xf32>
    %242 = arith.addf %241, %240 : vector<8x32xf32>
    %243 = arith.divf %241, %242 : vector<8x32xf32>
    %244 = arith.index_cast %c6_i32 : i32 to index
    %c0_95 = arith.constant 0 : index
    %c0_96 = arith.constant 0 : index
    %245 = vector.load %arg3[%244, %c0_95, %c0_96] : memref<8x8x32xf32, #tpu.memory_space<vmem>>, vector<1x8x32xf32>
    %246 = vector.shape_cast %245 : vector<1x8x32xf32> to vector<8x32xf32>
    %247 = arith.mulf %234, %225 : vector<8x32xf32>
    %248 = arith.addf %246, %247 : vector<8x32xf32>
    %249 = math.tanh %248 : vector<8x32xf32>
    %250 = arith.subf %216, %249 : vector<8x32xf32>
    %251 = arith.mulf %243, %250 : vector<8x32xf32>
    %252 = arith.addf %249, %251 : vector<8x32xf32>
    %253 = arith.index_cast %c6_i32 : i32 to index
    %c0_97 = arith.constant 0 : index
    %c0_98 = arith.constant 0 : index
    %254 = vector.load %arg9[%253, %c0_97, %c0_98] : memref<8x8x32xf32, #tpu.memory_space<vmem>>, vector<1x8x32xf32>
    %255 = vector.shape_cast %254 : vector<1x8x32xf32> to vector<8x32xf32>
    %256 = vector.shape_cast %252 : vector<8x32xf32> to vector<1x8x32xf32>
    tpu.vector_store %arg9[%253, %c0_97, %c0_98], %256 {strides = array<i32>} : memref<8x8x32xf32, #tpu.memory_space<vmem>>, vector<1x8x32xf32>,
    %c7_i32 = arith.constant 7 : i32
    %cst_99 = arith.constant dense<0.000000e+00> : vector<8x32xf32>
    %257 = tpu.matmul %252, %0, %cst_99 {dimension_numbers = #tpu.dot_dimension_numbers<[1], [0], [0], [1], [0, 0, 1, 1], [], []>} : vector<8x32xf32>, vector<32x32xf32>, vector<8x32xf32> -> vector<8x32xf32>
    %cst_100 = arith.constant dense<0.000000e+00> : vector<8x32xf32>
    %258 = tpu.matmul %252, %1, %cst_100 {dimension_numbers = #tpu.dot_dimension_numbers<[1], [0], [0], [1], [0, 0, 1, 1], [], []>} : vector<8x32xf32>, vector<32x32xf32>, vector<8x32xf32> -> vector<8x32xf32>
    %cst_101 = arith.constant dense<0.000000e+00> : vector<8x32xf32>
    %259 = tpu.matmul %252, %2, %cst_101 {dimension_numbers = #tpu.dot_dimension_numbers<[1], [0], [0], [1], [0, 0, 1, 1], [], []>} : vector<8x32xf32>, vector<32x32xf32>, vector<8x32xf32> -> vector<8x32xf32>
    %260 = vector.broadcast %3 : vector<1x32xf32> to vector<8x32xf32>
    %261 = arith.addf %259, %260 : vector<8x32xf32>
    %262 = arith.index_cast %c7_i32 : i32 to index
    %c0_102 = arith.constant 0 : index
    %c0_103 = arith.constant 0 : index
    %263 = vector.load %arg1[%262, %c0_102, %c0_103] : memref<8x8x32xf32, #tpu.memory_space<vmem>>, vector<1x8x32xf32>
    %264 = vector.shape_cast %263 : vector<1x8x32xf32> to vector<8x32xf32>
    %265 = arith.addf %264, %257 : vector<8x32xf32>
    %266 = arith.negf %265 : vector<8x32xf32>
    %267 = math.exp %266 : vector<8x32xf32>
    %cst_104 = arith.constant 1.000000e+00 : f32
    %268 = vector.broadcast %cst_104 : f32 to vector<8x32xf32>
    %269 = arith.addf %268, %267 : vector<8x32xf32>
    %270 = arith.divf %268, %269 : vector<8x32xf32>
    %271 = arith.index_cast %c7_i32 : i32 to index
    %c0_105 = arith.constant 0 : index
    %c0_106 = arith.constant 0 : index
    %272 = vector.load %arg2[%271, %c0_105, %c0_106] : memref<8x8x32xf32, #tpu.memory_space<vmem>>, vector<1x8x32xf32>
    %273 = vector.shape_cast %272 : vector<1x8x32xf32> to vector<8x32xf32>
    %274 = arith.addf %273, %258 : vector<8x32xf32>
    %275 = arith.negf %274 : vector<8x32xf32>
    %276 = math.exp %275 : vector<8x32xf32>
    %cst_107 = arith.constant 1.000000e+00 : f32
    %277 = vector.broadcast %cst_107 : f32 to vector<8x32xf32>
    %278 = arith.addf %277, %276 : vector<8x32xf32>
    %279 = arith.divf %277, %278 : vector<8x32xf32>
    %280 = arith.index_cast %c7_i32 : i32 to index
    %c0_108 = arith.constant 0 : index
    %c0_109 = arith.constant 0 : index
    %281 = vector.load %arg3[%280, %c0_108, %c0_109] : memref<8x8x32xf32, #tpu.memory_space<vmem>>, vector<1x8x32xf32>
    %282 = vector.shape_cast %281 : vector<1x8x32xf32> to vector<8x32xf32>
    %283 = arith.mulf %270, %261 : vector<8x32xf32>
    %284 = arith.addf %282, %283 : vector<8x32xf32>
    %285 = math.tanh %284 : vector<8x32xf32>
    %286 = arith.subf %252, %285 : vector<8x32xf32>
    %287 = arith.mulf %279, %286 : vector<8x32xf32>
    %288 = arith.addf %285, %287 : vector<8x32xf32>
    %289 = arith.index_cast %c7_i32 : i32 to index
    %c0_110 = arith.constant 0 : index
    %c0_111 = arith.constant 0 : index
    %290 = vector.load %arg9[%289, %c0_110, %c0_111] : memref<8x8x32xf32, #tpu.memory_space<vmem>>, vector<1x8x32xf32>
    %291 = vector.shape_cast %290 : vector<1x8x32xf32> to vector<8x32xf32>
    %292 = vector.shape_cast %288 : vector<8x32xf32> to vector<1x8x32xf32>
    tpu.vector_store %arg9[%289, %c0_110, %c0_111], %292 {strides = array<i32>} : memref<8x8x32xf32, #tpu.memory_space<vmem>>, vector<1x8x32xf32>,
    %c8_i32 = arith.constant 8 : i32
    %c0_112 = arith.constant 0 : index
    %c0_113 = arith.constant 0 : index
    %293 = vector.load %arg10[%c0_112, %c0_113] : memref<8x32xf32, #tpu.memory_space<vmem>>, vector<8x32xf32>
    tpu.vector_store %arg10[%c0_112, %c0_113], %288 {strides = array<i32>} : memref<8x32xf32, #tpu.memory_space<vmem>>, vector<8x32xf32>,
    return
  }
  func.func @transform_0(%arg0: i32) -> (i32, i32, i32) {
    %c0_i32 = arith.constant 0 : i32
    %c0_i32_0 = arith.constant 0 : i32
    %c0_i32_1 = arith.constant 0 : i32
    return %c0_i32, %arg0, %c0_i32_0 : i32, i32, i32
  }
  func.func @transform_1(%arg0: i32) -> (i32, i32, i32) {
    %c0_i32 = arith.constant 0 : i32
    %c0_i32_0 = arith.constant 0 : i32
    %c0_i32_1 = arith.constant 0 : i32
    return %c0_i32, %arg0, %c0_i32_0 : i32, i32, i32
  }
  func.func @transform_2(%arg0: i32) -> (i32, i32, i32) {
    %c0_i32 = arith.constant 0 : i32
    %c0_i32_0 = arith.constant 0 : i32
    %c0_i32_1 = arith.constant 0 : i32
    return %c0_i32, %arg0, %c0_i32_0 : i32, i32, i32
  }
  func.func @transform_3(%arg0: i32) -> (i32, i32) {
    %c0_i32 = arith.constant 0 : i32
    %c0_i32_0 = arith.constant 0 : i32
    return %arg0, %c0_i32 : i32, i32
  }
  func.func @transform_4(%arg0: i32) -> (i32, i32) {
    %c0_i32 = arith.constant 0 : i32
    %c0_i32_0 = arith.constant 0 : i32
    %c0_i32_1 = arith.constant 0 : i32
    return %c0_i32, %c0_i32_0 : i32, i32
  }
  func.func @transform_5(%arg0: i32) -> (i32, i32) {
    %c0_i32 = arith.constant 0 : i32
    %c0_i32_0 = arith.constant 0 : i32
    %c0_i32_1 = arith.constant 0 : i32
    return %c0_i32, %c0_i32_0 : i32, i32
  }
  func.func @transform_6(%arg0: i32) -> (i32, i32) {
    %c0_i32 = arith.constant 0 : i32
    %c0_i32_0 = arith.constant 0 : i32
    %c0_i32_1 = arith.constant 0 : i32
    return %c0_i32, %c0_i32_0 : i32, i32
  }
  func.func @transform_7(%arg0: i32) -> (i32, i32) {
    %c0_i32 = arith.constant 0 : i32
    %c0_i32_0 = arith.constant 0 : i32
    %c0_i32_1 = arith.constant 0 : i32
    return %c0_i32, %c0_i32_0 : i32, i32
  }
  func.func @transform_8(%arg0: i32) -> (i32, i32, i32) {
    %c0_i32 = arith.constant 0 : i32
    %c0_i32_0 = arith.constant 0 : i32
    %c0_i32_1 = arith.constant 0 : i32
    return %c0_i32, %arg0, %c0_i32_0 : i32, i32, i32
  }
  func.func @transform_9(%arg0: i32) -> (i32, i32) {
    %c0_i32 = arith.constant 0 : i32
    %c0_i32_0 = arith.constant 0 : i32
    return %arg0, %c0_i32 : i32, i32
  }
}

</mosaic_0001>

<bundles_post_ra>
// kernel: tpu_custom_call.1
= control target key start
LH: loop header
LB: loop body
LE: loop exit
PB: predicated region body
PF: predicated region fallthrough
CT: control target
= control target key end

     0   :  { %15 = vsyncpa [#allocation3], 0  ;;  %s1798_s0 = inlined_call_operand.hbm [shape: f32[8,8,32], index: 0, kind: input, shape index: {}]   ;;  %s1799_s1 = inlined_call_operand.hbm [shape: f32[8,8,32], index: 1, kind: input, shape index: {}]   ;;  %s1800_s2 = inlined_call_operand.hbm [shape: f32[8,8,32], index: 2, kind: input, shape index: {}]   ;;  %s1801_s3 = inlined_call_operand.hbm [shape: f32[8,32], index: 3, kind: input, shape index: {}]   ;;  %s1802_s4 = inlined_call_operand.hbm [shape: f32[32,32], index: 4, kind: input, shape index: {}]   ;;  %s1803_s5 = inlined_call_operand.hbm [shape: f32[32,32], index: 5, kind: input, shape index: {}]   ;;  %s1804_s6 = inlined_call_operand.hbm [shape: f32[32,32], index: 6, kind: input, shape index: {}]   ;;  %s1805_s7 = inlined_call_operand.vmem [shape: f32[1,32], index: 7, kind: input, shape index: {}]   ;;  %s1806_s8 = inlined_call_operand.hbm [shape: f32[8,8,32], index: 8, kind: output, shape index: {0}]   ;;  %s1807_s9 = inlined_call_operand.hbm [shape: f32[8,32], index: 9, kind: output, shape index: {1}]  }
   0x1   :  { %16 = vsyncpa [#allocation6], 0 }
   0x2   :  { %17 = vsyncpa [#allocation9], 0 }
   0x3   :  { %18 = vsyncpa [#allocation12], 0 }
   0x4   :  { %19 = vsyncpa [#allocation4], 0 }
   0x5   :  { %20 = vsyncpa [#allocation16], 0  ;;  %s38_s11 = sshll.u32 %s1799_s1, 4  ;;  %s1489_s12 = smov [#allocation5]   ;;  %s39_s11 = int_to_ptr.hbm [resolvable:$true] %s38_s11 }
   0x6   :  { %s40_s13 = sshll.u32 %s1489_s12, 4  ;;  %s65_s16 = sshll.u32 %s1801_s3, 4  ;;  %s41_s13 = int_to_ptr.vmem [resolvable:$true] %s40_s13  ;;  %s66_s16 = int_to_ptr.hbm [resolvable:$true] %s65_s16 }
   0x7   :  { %s1490_s17 = smov 128   ;;  %s1491_s18 = smov 8  }
   0x8   :  { %46 = dma.hbm_to_vmem [thread:$0]  %s39_s11, 1024, %s41_s13, [#allocation6], %s1490_s17, %s1490_s17, %s1491_s18  }
   0x9   :  { %s1492_s19 = smov [#allocation8]   ;;  %s88_s1 = sshll.u32 %s1803_s5, 4  ;;  %s89_s1 = int_to_ptr.hbm [resolvable:$true] %s88_s1 }
   0xa   :  { %s67_s20 = sshll.u32 %s1492_s19, 4  ;;  %s25_s3 = sshll.u32 %s1798_s0, 4  ;;  %s68_s20 = int_to_ptr.vmem [resolvable:$true] %s67_s20  ;;  %s26_s3 = int_to_ptr.hbm [resolvable:$true] %s25_s3 }
   0xb   :  { %70 = dma.hbm_to_vmem [thread:$0]  %s66_s16, 128, %s68_s20, [#allocation9]  }
   0xc   :  { %s1493_s25 = smov [#allocation11]   ;;  %s1494_s27 = smov [#allocation2]  }
   0xd   :  { %s90_s26 = sshll.u32 %s1493_s25, 4  ;;  %s27_s28 = sshll.u32 %s1494_s27, 4  ;;  %s91_s26 = int_to_ptr.vmem [resolvable:$true] %s90_s26  ;;  %s28_s28 = int_to_ptr.vmem [resolvable:$true] %s27_s28 }
   0xe   :  { %96 = dma.hbm_to_vmem [thread:$0]  %s89_s1, 512, %s91_s26, [#allocation12], %s1490_s17, %s1490_s17, %s1491_s18  }
   0xf   :  { %s51_s5 = sshll.u32 %s1800_s2, 4  ;;  %s75_s11 = sshll.u32 %s1802_s4, 4  ;;  %s52_s5 = int_to_ptr.hbm [resolvable:$true] %s51_s5  ;;  %s76_s11 = int_to_ptr.hbm [resolvable:$true] %s75_s11 }
  0x10   :  { %33 = dma.hbm_to_vmem [thread:$0]  %s26_s3, 1024, %s28_s28, [#allocation3], %s1490_s17, %s1490_s17, %s1491_s18  }
  0x11   :  { %s1495_s12 = smov [#allocation7]   ;;  %s1496_s14 = smov [#allocation10]  }
  0x12   :  { %s53_s13 = sshll.u32 %s1495_s12, 4  ;;  %s77_s2 = sshll.u32 %s1496_s14, 4  ;;  %s54_s13 = int_to_ptr.vmem [resolvable:$true] %s53_s13  ;;  %s78_s2 = int_to_ptr.vmem [resolvable:$true] %s77_s2 }
  0x13   :  { %59 = dma.hbm_to_vmem [thread:$0]  %s52_s5, 1024, %s54_s13, [#allocation6], %s1490_s17, %s1490_s17, %s1491_s18  }
  0x14   :  { %s101_s19 = sshll.u32 %s1804_s6, 4  ;;  %s1497_s4 = smov [#allocation13]   ;;  %s102_s19 = int_to_ptr.hbm [resolvable:$true] %s101_s19 }
  0x15   :  { %83 = dma.hbm_to_vmem [thread:$0]  %s76_s11, 512, %s78_s2, [#allocation9], %s1490_s17, %s1490_s17, %s1491_s18  }
  0x16   :  { %s103_s20 = sshll.u32 %s1497_s4, 4  ;;  %s104_s20 = int_to_ptr.vmem [resolvable:$true] %s103_s20 }
  0x17   :  { %109 = dma.hbm_to_vmem [thread:$0]  %s102_s19, 512, %s104_s20, [#allocation12], %s1490_s17, %s1490_s17, %s1491_s18  }
  0x18   :  { %1477 = dma.done.wait [#allocation3], 1024  }
  0x19   :  { %1478 = vsyncadd [#allocation3], 4294966272 }
  0x1a   :  { %1479 = dma.done.wait [#allocation6], 2048  }
  0x1b   :  { %1480 = vsyncadd [#allocation6], 4294965248 }
  0x1c   :  { %1481 = dma.done.wait [#allocation9], 640  }
  0x1d   :  { %1482 = vsyncadd [#allocation9], 4294966656 }
  0x1e   :  { %1483 = dma.done.wait [#allocation12], 1024  }
  0x1f   :  { %1484 = vsyncadd [#allocation12], 4294966272  ;;  %v1589_v0 = vld [vmem:[#allocation10 + $0x18] sm:$0xff]  ;;  %v1593_v2 = vld [vmem:[#allocation10 + $0x10] sm:$0xff]  ;;  %vm154_vm0 = vcmask 261120   ;;  %s1097_s24 = sshll.u32 %s1806_s8, 4  ;;  %s1098_s24 = int_to_ptr.hbm [resolvable:$true] %s1097_s24 }
  0x20   :  { %v1591_v1 = vld [vmem:[#allocation11 + $0x18] sm:$0xff]  ;;  %170 = vmatpush.msra.mxu0 %v1589_v0  ;;  %v1597_v3 = vld [vmem:[#allocation11 + $0x10] sm:$0xff]  ;;  %v1599_v4 = vld [vmem:[#allocation10 + $0x8] sm:$0xff]  ;;  %286 = vmatpush.msra.mxu3 %v1589_v0  ;;  %s1499_s3 = smov [#allocation15]   ;;  %s1111_s28 = sshll.u32 %s1807_s9, 4  ;;  %s1112_s28 = int_to_ptr.hbm [resolvable:$true] %s1111_s28 }
  0x21   :  { %190 = vmatpush.msra.mxu1 %v1591_v1  ;;  %v1601_v5 = vld [vmem:[#allocation11 + $0x8] sm:$0xff]  ;;  %v1606_v6 = vld [vmem:[#allocation13 + $0x18] sm:$0xff]  ;;  %v1608_v7 = vld [vmem:[#allocation13 + $0x10] sm:$0xff]  ;;  %s1109_s25 = sshll.u32 %s1499_s3, 4  ;;  %s1110_s25 = int_to_ptr.vmem [resolvable:$true] %s1109_s25 }
  0x22   :  { %171 = vmatpush.msra.mxu0 %v1593_v2  ;;  %v1610_v8 = vld [vmem:[#allocation10] sm:$0xff]  ;;  %213 = vmatpush.msra.mxu2 %v1606_v6  ;;  %v1618_v10 = vld [vmem:[#allocation8] sm:$0xff]  ;;  %v1621_v11 = vld [vmem:[#allocation13 + $0x8] sm:$0xff] }
  0x23   :  { %191 = vmatpush.msra.mxu1 %v1597_v3  ;;  %v1612_v9 = vld [vmem:[#allocation11] sm:$0xff]  ;;  %287 = vmatpush.msra.mxu3 %v1593_v2  ;;  %v221_v13 = vld [vmem:[#allocation2] sm:$0xff] }
  0x24   :  { %172 = vmatpush.msra.mxu0 %v1599_v4  ;;  %214 = vmatpush.msra.mxu2 %v1608_v7  ;;  %v1630_v12 = vld [vmem:[#allocation13] sm:$0xff]  ;;  %v242_v14 = vld [vmem:[#allocation5] sm:$0xff] }
  0x25   :  { %192 = vmatpush.msra.mxu1 %v1601_v5  ;;  %288 = vmatpush.msra.mxu3 %v1599_v4  ;;  %v1668_v28 = vld [vmem:[%s1805_s7] ss:$0 sm:$0xff]  ;;  %v357_v55 = vld [vmem:[#allocation5 + $0x8] sm:$0xff]  ;;  %s1498_s7 = smov [#allocation14]  }
  0x26   :  { %173 = vmatpush.msra.mxu0 %v1610_v8  ;;  %215 = vmatpush.msra.mxu2 %v1621_v11  ;;  %v263_v41 = vld [vmem:[#allocation7] sm:$0xff]  ;;  %v335_v59 = vld [vmem:[#allocation2 + $0x8] sm:$0xff]  ;;  %s1095_s22 = sshll.u32 %s1498_s7, 4  ;;  %s1096_s22 = int_to_ptr.vmem [resolvable:$true] %s1095_s22 }
  0x27   :  { %193 = vmatpush.msra.mxu1 %v1612_v9  ;;  %1129 = vmatmul.msk.f32.vlgmr.msra.gmra.mxu0 %vm154_vm0, %v1618_v10 }
  0x28   :  { %1130 = vmatmul.msk.f32.vlgmr.msra.gmra.mxu1 %vm154_vm0, %v1618_v10  ;;  %306 = vmatpush.msrb.mxu0 %v1591_v1 }
  0x29   :  { %326 = vmatpush.msrb.mxu1 %v1606_v6  ;;  %289 = vmatpush.msra.mxu3 %v1610_v8 }
  0x2a   :  { %216 = vmatpush.msra.mxu2 %v1630_v12  ;;  %307 = vmatpush.msrb.mxu0 %v1597_v3 }
  0x2b   :  { %1131 = vmatmul.msk.f32.vlgmr.msra.gmra.mxu2 %vm154_vm0, %v1618_v10  ;;  %327 = vmatpush.msrb.mxu1 %v1608_v7 }
  0x2c   :  { %308 = vmatpush.msrb.mxu0 %v1601_v5  ;;  %403 = vmatpush.msrb.mxu2 %v1589_v0 }
  0x2d   :  { %328 = vmatpush.msrb.mxu1 %v1621_v11  ;;  %423 = vmatpush.msrb.mxu3 %v1591_v1 }
  0x2e   :  { %309 = vmatpush.msrb.mxu0 %v1612_v9  ;;  %404 = vmatpush.msrb.mxu2 %v1593_v2 }
  0x2f   :  { %329 = vmatpush.msrb.mxu1 %v1630_v12  ;;  %424 = vmatpush.msrb.mxu3 %v1597_v3 }
  0x30   :  { %443 = vmatpush.msra.mxu0 %v1606_v6  ;;  %405 = vmatpush.msrb.mxu2 %v1599_v4 }
  0x31   :  { %520 = vmatpush.msra.mxu1 %v1589_v0  ;;  %425 = vmatpush.msrb.mxu3 %v1601_v5 }
  0x32   :  { %444 = vmatpush.msra.mxu0 %v1608_v7  ;;  %406 = vmatpush.msrb.mxu2 %v1610_v8 }
  0x33   :  { %426 = vmatpush.msrb.mxu3 %v1612_v9  ;;  %521 = vmatpush.msra.mxu1 %v1593_v2 }
  0x34   :  { %445 = vmatpush.msra.mxu0 %v1621_v11  ;;  %540 = vmatpush.msra.mxu2 %v1591_v1 }
  0x35   :  { %522 = vmatpush.msra.mxu1 %v1599_v4 }
  0x36   :  { %446 = vmatpush.msra.mxu0 %v1630_v12  ;;  %541 = vmatpush.msra.mxu2 %v1597_v3 }
  0x37   :  { %523 = vmatpush.msra.mxu1 %v1610_v8 }
  0x38   :  { %542 = vmatpush.msra.mxu2 %v1601_v5 }
  0x3a   :  { %543 = vmatpush.msra.mxu2 %v1612_v9 }
  0xa4   :  { %v175_v15 = vpop.f32.mrf.mxu0 }
  0xa5   :  { %v195_v16 = vpop.f32.mrf.mxu1  ;;  %v222_v17 = vadd.f32 %v221_v13, %v175_v15 }
  0xa6   :  { %v243_v18 = vadd.f32 %v242_v14, %v195_v16 }
  0xa7   :  { %v1132_v19 = vmul.f32 -1.442695, %v222_v17 }
  0xa8   :  { %v1133_v20 = vmul.f32 -1.442695, %v243_v18 }
  0xa9   :  { %1181 = vpow2.f32 %v1132_v19 }
  0xaa   :  { %1183 = vpow2.f32 %v1133_v20 }
  0xae   :  { %v218_v31 = vpop.f32.mrf.mxu2 }
  0xaf   :  { %v1182_v21 = vpop.eup %1181  ;;  %v219_v35 = vadd.f32 %v1668_v28, %v218_v31  ;;  %v379_v31 = vld [vmem:[#allocation7 + $0x8] sm:$0xff] }
  0xb0   :  { %v1184_v22 = vpop.eup %1183  ;;  %v226_v23 = vadd.f32 1.0, %v1182_v21 }
  0xb1   :  { %v247_v24 = vadd.f32 1.0, %v1184_v22 }
  0xb2   :  { %1185 = vrcp.f32 %v226_v23  ;;  %v238_v32 = vand.u32 2147483648, %v226_v23  ;;  %v236_v34 = vand.u32 2147483647, %v226_v23  ;;  %vm232_vm2 = vweird.f32 %v226_v23 }
  0xb3   :  { %1187 = vrcp.f32 %v247_v24  ;;  %vm253_vm5 = vweird.f32 %v247_v24  ;;  %v259_v45 = vand.u32 2147483648, %v247_v24  ;;  %v257_v47 = vand.u32 2147483647, %v247_v24 }
  0xb4   :  { %v239_v38 = vor.u32 1.1754944e-38, %v238_v32  ;;  %vm237_vm4 = vcmp.eq.f32.partialorder %v236_v34, 8.507059e+37 }
  0xb5   :  { %v260_v48 = vor.u32 1.1754944e-38, %v259_v45  ;;  %vm258_vm8 = vcmp.eq.f32.partialorder %v257_v47, 8.507059e+37  ;;  %v452_v45 = vld [vmem:[#allocation2 + $0x10] sm:$0xff] }
  0xb8   :  { %v1186_v25 = vpop.eup %1185 }
  0xb9   :  { %v1188_v26 = vpop.eup %1187  ;;  %v228_v27 = vmul.f32 %v1186_v25, %v226_v23  ;;  %vm233_vm1 = vweird.f32 %v1186_v25 }
  0xba   :  { %v249_v30 = vmul.f32 %v1188_v26, %v247_v24  ;;  %vm234_vm3 = vmor %vm232_vm2, %vm233_vm1  ;;  %vm254_vm6 = vweird.f32 %v1188_v26 }
  0xbb   :  { %v229_v29 = vsub.f32 1.0, %v228_v27  ;;  %vm255_vm7 = vmor %vm253_vm5, %vm254_vm6 }
  0xbc   :  { %v250_v37 = vsub.f32 1.0, %v249_v30 }
  0xbd   :  { %v230_v33 = vmul.f32 %v1186_v25, %v229_v29 }
  0xbe   :  { %v251_v43 = vmul.f32 %v1188_v26, %v250_v37 }
  0xbf   :  { %v231_v36 = vadd.f32 %v1186_v25, %v230_v33 }
  0xc0   :  { %v252_v46 = vadd.f32 %v1188_v26, %v251_v43 }
  0xc1   :  { %v235_v39 = vsel %vm234_vm3, %v1186_v25, %v231_v36 }
  0xc2   :  { %v240_v40 = vsel %vm237_vm4, %v239_v38, %v235_v39  ;;  %v256_v49 = vsel %vm255_vm7, %v1188_v26, %v252_v46  ;;  %v474_v46 = vld [vmem:[#allocation5 + $0x10] sm:$0xff] }
  0xc3   :  { %v264_v42 = vmul.f32 %v240_v40, %v219_v35  ;;  %v261_v52 = vsel %vm258_vm8, %v260_v48, %v256_v49 }
  0xc5   :  { %v265_v44 = vadd.f32 %v264_v42, %v263_v41 }
  0xc7   :  { %1189 = vtanh.f32 %v265_v44 }
  0xcd   :  { %v1190_v50 = vpop.eup %1189 }
  0xce   :  { %v267_v51 = vsub.f32 %v1618_v10, %v1190_v50 }
  0xd0   :  { %v268_v53 = vmul.f32 %v267_v51, %v261_v52 }
  0xd2   :  { %v1672_v54 = vadd.f32 %v1190_v50, %v268_v53 }
  0xd4   :  { %270 = vst.msk [vmem:[#allocation14] sm:$0xff] %vm154_vm0, %v1672_v54  ;;  %1134 = vmatmul.msk.f32.vlgmr.msra.gmra.mxu3 %vm154_vm0, %v1672_v54  ;;  %1135 = vmatmul.msk.f32.vlgmr.msrb.gmra.mxu0 %vm154_vm0, %v1672_v54 }
  0xd5   :  { %1136 = vmatmul.msk.f32.vlgmr.msrb.gmra.mxu1 %vm154_vm0, %v1672_v54  ;;  %560 = vmatpush.msra.mxu3 %v1606_v6 }
  0xd6   :  { %637 = vmatpush.msrb.mxu0 %v1589_v0  ;;  %657 = vmatpush.msrb.mxu1 %v1591_v1 }
  0xd7   :  { %561 = vmatpush.msra.mxu3 %v1608_v7 }
  0xd8   :  { %638 = vmatpush.msrb.mxu0 %v1593_v2  ;;  %658 = vmatpush.msrb.mxu1 %v1597_v3 }
  0xd9   :  { %562 = vmatpush.msra.mxu3 %v1621_v11 }
  0xda   :  { %639 = vmatpush.msrb.mxu0 %v1599_v4  ;;  %659 = vmatpush.msrb.mxu1 %v1601_v5 }
  0xdb   :  { %563 = vmatpush.msra.mxu3 %v1630_v12 }
  0xdc   :  { %640 = vmatpush.msrb.mxu0 %v1610_v8  ;;  %660 = vmatpush.msrb.mxu1 %v1612_v9 }
 0x151   :  { %v311_v56 = vpop.f32.mrf.mxu0 }
 0x152   :  { %v358_v57 = vadd.f32 %v357_v55, %v311_v56  ;;  %v331_v23 = vpop.f32.mrf.mxu1 }
 0x153   :  { %v332_v27 = vadd.f32 %v1668_v28, %v331_v23 }
 0x154   :  { %v1138_v58 = vmul.f32 -1.442695, %v358_v57 }
 0x156   :  { %1191 = vpow2.f32 %v1138_v58 }
 0x157   :  { %v291_v60 = vpop.f32.mrf.mxu3 }
 0x158   :  { %v336_v61 = vadd.f32 %v335_v59, %v291_v60 }
 0x15a   :  { %v1137_v62 = vmul.f32 -1.442695, %v336_v61 }
 0x15c   :  { %1193 = vpow2.f32 %v1137_v62  ;;  %v1192_v63 = vpop.eup %1191 }
 0x15d   :  { %v362_v13 = vadd.f32 1.0, %v1192_v63 }
 0x15f   :  { %v374_v36 = vand.u32 2147483648, %v362_v13  ;;  %vm368_vm14 = vweird.f32 %v362_v13  ;;  %v372_v37 = vand.u32 2147483647, %v362_v13 }
 0x161   :  { %v375_v40 = vor.u32 1.1754944e-38, %v374_v36  ;;  %vm373_vm1 = vcmp.eq.f32.partialorder %v372_v37, 8.507059e+37 }
 0x162   :  { %v1194_v10 = vpop.eup %1193 }
 0x163   :  { %v340_v14 = vadd.f32 1.0, %v1194_v10 }
 0x165   :  { %1195 = vrcp.f32 %v340_v14  ;;  %v352_v20 = vand.u32 2147483648, %v340_v14  ;;  %v350_v22 = vand.u32 2147483647, %v340_v14  ;;  %vm346_vm10 = vweird.f32 %v340_v14 }
 0x166   :  { %1197 = vrcp.f32 %v362_v13 }
 0x167   :  { %v353_v26 = vor.u32 1.1754944e-38, %v352_v20  ;;  %vm351_vm12 = vcmp.eq.f32.partialorder %v350_v22, 8.507059e+37  ;;  %v496_v20 = vld [vmem:[#allocation7 + $0x10] sm:$0xff] }
 0x16b   :  { %v1196_v15 = vpop.eup %1195 }
 0x16c   :  { %v1198_v16 = vpop.eup %1197  ;;  %v342_v17 = vmul.f32 %v1196_v15, %v340_v14  ;;  %vm347_vm9 = vweird.f32 %v1196_v15 }
 0x16d   :  { %v364_v19 = vmul.f32 %v1198_v16, %v362_v13  ;;  %vm348_vm11 = vmor %vm346_vm10, %vm347_vm9  ;;  %vm369_vm13 = vweird.f32 %v1198_v16 }
 0x16e   :  { %v343_v18 = vsub.f32 1.0, %v342_v17  ;;  %vm370_vm15 = vmor %vm368_vm14, %vm369_vm13 }
 0x16f   :  { %v365_v25 = vsub.f32 1.0, %v364_v19 }
 0x170   :  { %v344_v21 = vmul.f32 %v1196_v15, %v343_v18 }
 0x171   :  { %v366_v33 = vmul.f32 %v1198_v16, %v365_v25 }
 0x172   :  { %v345_v24 = vadd.f32 %v1196_v15, %v344_v21 }
 0x173   :  { %v367_v35 = vadd.f32 %v1198_v16, %v366_v33 }
 0x174   :  { %v349_v29 = vsel %vm348_vm11, %v1196_v15, %v345_v24 }
 0x175   :  { %v354_v30 = vsel %vm351_vm12, %v353_v26, %v349_v29  ;;  %v371_v38 = vsel %vm370_vm15, %v1198_v16, %v367_v35  ;;  %v569_v35 = vld [vmem:[#allocation2 + $0x18] sm:$0xff] }
 0x176   :  { %v380_v32 = vmul.f32 %v354_v30, %v332_v27  ;;  %v376_v42 = vsel %vm373_vm1, %v375_v40, %v371_v38 }
 0x178   :  { %v381_v34 = vadd.f32 %v380_v32, %v379_v31 }
 0x17a   :  { %1199 = vtanh.f32 %v381_v34 }
 0x180   :  { %v1200_v39 = vpop.eup %1199 }
 0x181   :  { %v383_v41 = vsub.f32 %v1672_v54, %v1200_v39 }
 0x183   :  { %v384_v43 = vmul.f32 %v383_v41, %v376_v42 }
 0x185   :  { %v1696_v44 = vadd.f32 %v1200_v39, %v384_v43  ;;  %v591_v39 = vld [vmem:[#allocation5 + $0x18] sm:$0xff] }
 0x187   :  { %387 = vst.msk [vmem:[#allocation14 + $0x8] sm:$0xff] %vm154_vm0, %v1696_v44  ;;  %1139 = vmatmul.msk.f32.vlgmr.msrb.gmra.mxu2 %vm154_vm0, %v1696_v44  ;;  %1140 = vmatmul.msk.f32.vlgmr.msrb.gmra.mxu3 %vm154_vm0, %v1696_v44 }
 0x188   :  { %1141 = vmatmul.msk.f32.vlgmr.msra.gmra.mxu0 %vm154_vm0, %v1696_v44  ;;  %677 = vmatpush.msrb.mxu2 %v1606_v6 }
 0x189   :  { %754 = vmatpush.msrb.mxu3 %v1589_v0  ;;  %774 = vmatpush.msra.mxu0 %v1591_v1 }
 0x18a   :  { %678 = vmatpush.msrb.mxu2 %v1608_v7 }
 0x18b   :  { %755 = vmatpush.msrb.mxu3 %v1593_v2  ;;  %775 = vmatpush.msra.mxu0 %v1597_v3 }
 0x18c   :  { %679 = vmatpush.msrb.mxu2 %v1621_v11 }
 0x18d   :  { %756 = vmatpush.msrb.mxu3 %v1599_v4  ;;  %776 = vmatpush.msra.mxu0 %v1601_v5 }
 0x18e   :  { %680 = vmatpush.msrb.mxu2 %v1630_v12 }
 0x18f   :  { %757 = vmatpush.msrb.mxu3 %v1610_v8  ;;  %777 = vmatpush.msra.mxu0 %v1612_v9 }
 0x205   :  { %v448_v13 = vpop.f32.mrf.mxu0 }
 0x206   :  { %v449_v17 = vadd.f32 %v1668_v28, %v448_v13 }
 0x20a   :  { %v408_v47 = vpop.f32.mrf.mxu2  ;;  %v428_v48 = vpop.f32.mrf.mxu3 }
 0x20b   :  { %v453_v49 = vadd.f32 %v452_v45, %v408_v47  ;;  %v475_v50 = vadd.f32 %v474_v46, %v428_v48 }
 0x20d   :  { %v1142_v51 = vmul.f32 -1.442695, %v453_v49  ;;  %v1143_v52 = vmul.f32 -1.442695, %v475_v50 }
 0x20f   :  { %1201 = vpow2.f32 %v1142_v51 }
 0x210   :  { %1203 = vpow2.f32 %v1143_v52 }
 0x215   :  { %v1202_v53 = vpop.eup %1201 }
 0x216   :  { %v1204_v54 = vpop.eup %1203  ;;  %v457_v55 = vadd.f32 1.0, %v1202_v53 }
 0x217   :  { %v479_v56 = vadd.f32 1.0, %v1204_v54 }
 0x218   :  { %1205 = vrcp.f32 %v457_v55  ;;  %v469_v61 = vand.u32 2147483648, %v457_v55  ;;  %v467_v10 = vand.u32 2147483647, %v457_v55  ;;  %vm463_vm3 = vweird.f32 %v457_v55 }
 0x219   :  { %1207 = vrcp.f32 %v479_v56  ;;  %v491_v25 = vand.u32 2147483648, %v479_v56  ;;  %vm485_vm7 = vweird.f32 %v479_v56  ;;  %v489_v26 = vand.u32 2147483647, %v479_v56 }
 0x21a   :  { %v470_v15 = vor.u32 1.1754944e-38, %v469_v61  ;;  %vm468_vm5 = vcmp.eq.f32.partialorder %v467_v10, 8.507059e+37 }
 0x21b   :  { %v492_v30 = vor.u32 1.1754944e-38, %v491_v25  ;;  %vm490_vm9 = vcmp.eq.f32.partialorder %v489_v26, 8.507059e+37 }
 0x21e   :  { %v1206_v57 = vpop.eup %1205 }
 0x21f   :  { %v1208_v58 = vpop.eup %1207  ;;  %v459_v59 = vmul.f32 %v1206_v57, %v457_v55  ;;  %vm464_vm2 = vweird.f32 %v1206_v57 }
 0x220   :  { %v481_v62 = vmul.f32 %v1208_v58, %v479_v56  ;;  %vm465_vm4 = vmor %vm463_vm3, %vm464_vm2  ;;  %vm486_vm6 = vweird.f32 %v1208_v58 }
 0x221   :  { %v460_v60 = vsub.f32 1.0, %v459_v59  ;;  %vm487_vm8 = vmor %vm485_vm7, %vm486_vm6 }
 0x222   :  { %v482_v16 = vsub.f32 1.0, %v481_v62  ;;  %v613_v62 = vld [vmem:[#allocation7 + $0x18] sm:$0xff] }
 0x223   :  { %v461_v63 = vmul.f32 %v1206_v57, %v460_v60 }
 0x224   :  { %v483_v22 = vmul.f32 %v1208_v58, %v482_v16 }
 0x225   :  { %v462_v14 = vadd.f32 %v1206_v57, %v461_v63 }
 0x226   :  { %v484_v24 = vadd.f32 %v1208_v58, %v483_v22 }
 0x227   :  { %v466_v18 = vsel %vm465_vm4, %v1206_v57, %v462_v14 }
 0x228   :  { %v471_v19 = vsel %vm468_vm5, %v470_v15, %v466_v18  ;;  %v488_v27 = vsel %vm487_vm8, %v1208_v58, %v484_v24 }
 0x229   :  { %v497_v21 = vmul.f32 %v471_v19, %v449_v17  ;;  %v493_v32 = vsel %vm490_vm9, %v492_v30, %v488_v27 }
 0x22b   :  { %v498_v23 = vadd.f32 %v497_v21, %v496_v20 }
 0x22d   :  { %1209 = vtanh.f32 %v498_v23 }
 0x233   :  { %v1210_v29 = vpop.eup %1209 }
 0x234   :  { %v500_v31 = vsub.f32 %v1696_v44, %v1210_v29 }
 0x236   :  { %v501_v33 = vmul.f32 %v500_v31, %v493_v32 }
 0x238   :  { %v1720_v34 = vadd.f32 %v1210_v29, %v501_v33 }
 0x23a   :  { %504 = vst.msk [vmem:[#allocation14 + $0x10] sm:$0xff] %vm154_vm0, %v1720_v34  ;;  %1144 = vmatmul.msk.f32.vlgmr.msra.gmra.mxu1 %vm154_vm0, %v1720_v34  ;;  %1145 = vmatmul.msk.f32.vlgmr.msra.gmra.mxu2 %vm154_vm0, %v1720_v34 }
 0x23b   :  { %1146 = vmatmul.msk.f32.vlgmr.msra.gmra.mxu3 %vm154_vm0, %v1720_v34  ;;  %794 = vmatpush.msra.mxu1 %v1606_v6 }
 0x23c   :  { %871 = vmatpush.msra.mxu2 %v1589_v0  ;;  %891 = vmatpush.msra.mxu3 %v1591_v1 }
 0x23d   :  { %795 = vmatpush.msra.mxu1 %v1608_v7 }
 0x23e   :  { %872 = vmatpush.msra.mxu2 %v1593_v2  ;;  %892 = vmatpush.msra.mxu3 %v1597_v3 }
 0x23f   :  { %796 = vmatpush.msra.mxu1 %v1621_v11 }
 0x240   :  { %873 = vmatpush.msra.mxu2 %v1599_v4  ;;  %893 = vmatpush.msra.mxu3 %v1601_v5 }
 0x241   :  { %797 = vmatpush.msra.mxu1 %v1630_v12 }
 0x242   :  { %874 = vmatpush.msra.mxu2 %v1610_v8  ;;  %894 = vmatpush.msra.mxu3 %v1612_v9 }
 0x2b7   :  { %v525_v36 = vpop.f32.mrf.mxu1 }
 0x2b8   :  { %v570_v37 = vadd.f32 %v569_v35, %v525_v36 }
 0x2ba   :  { %v1147_v38 = vmul.f32 -1.442695, %v570_v37 }
 0x2bc   :  { %1211 = vpow2.f32 %v1147_v38 }
 0x2bd   :  { %v545_v40 = vpop.f32.mrf.mxu2 }
 0x2be   :  { %v592_v41 = vadd.f32 %v591_v39, %v545_v40  ;;  %v565_v54 = vpop.f32.mrf.mxu3 }
 0x2bf   :  { %v566_v59 = vadd.f32 %v1668_v28, %v565_v54 }
 0x2c0   :  { %v1148_v42 = vmul.f32 -1.442695, %v592_v41 }
 0x2c2   :  { %v1212_v43 = vpop.eup %1211  ;;  %1213 = vpow2.f32 %v1148_v42 }
 0x2c3   :  { %v574_v44 = vadd.f32 1.0, %v1212_v43 }
 0x2c5   :  { %1215 = vrcp.f32 %v574_v44  ;;  %v586_v50 = vand.u32 2147483648, %v574_v44  ;;  %v584_v52 = vand.u32 2147483647, %v574_v44  ;;  %vm580_vm11 = vweird.f32 %v574_v44 }
 0x2c7   :  { %v587_v57 = vor.u32 1.1754944e-38, %v586_v50  ;;  %vm585_vm13 = vcmp.eq.f32.partialorder %v584_v52, 8.507059e+37 }
 0x2c8   :  { %v1214_v45 = vpop.eup %1213 }
 0x2c9   :  { %v596_v46 = vadd.f32 1.0, %v1214_v45 }
 0x2cb   :  { %v1216_v47 = vpop.eup %1215  ;;  %1217 = vrcp.f32 %v596_v46  ;;  %v608_v15 = vand.u32 2147483648, %v596_v46  ;;  %vm602_vm15 = vweird.f32 %v596_v46  ;;  %v606_v16 = vand.u32 2147483647, %v596_v46 }
 0x2cc   :  { %v576_v48 = vmul.f32 %v1216_v47, %v574_v44  ;;  %vm581_vm10 = vweird.f32 %v1216_v47  ;;  %v730_v44 = vld [vmem:[#allocation7 + $0x20] sm:$0xff] }
 0x2cd   :  { %vm582_vm12 = vmor %vm580_vm11, %vm581_vm10  ;;  %v609_v19 = vor.u32 1.1754944e-38, %v608_v15  ;;  %vm607_vm2 = vcmp.eq.f32.partialorder %v606_v16, 8.507059e+37 }
 0x2ce   :  { %v577_v49 = vsub.f32 1.0, %v576_v48 }
 0x2d0   :  { %v578_v51 = vmul.f32 %v1216_v47, %v577_v49 }
 0x2d1   :  { %v1218_v53 = vpop.eup %1217 }
 0x2d2   :  { %v598_v55 = vmul.f32 %v1218_v53, %v596_v46  ;;  %v579_v56 = vadd.f32 %v1216_v47, %v578_v51  ;;  %vm603_vm14 = vweird.f32 %v1218_v53 }
 0x2d3   :  { %vm604_vm1 = vmor %vm602_vm15, %vm603_vm14 }
 0x2d4   :  { %v599_v58 = vsub.f32 1.0, %v598_v55  ;;  %v583_v60 = vsel %vm582_vm12, %v1216_v47, %v579_v56 }
 0x2d5   :  { %v588_v61 = vsel %vm585_vm13, %v587_v57, %v583_v60 }
 0x2d6   :  { %v614_v63 = vmul.f32 %v588_v61, %v566_v59  ;;  %v600_v10 = vmul.f32 %v1218_v53, %v599_v58  ;;  %v825_v58 = vld [vmem:[#allocation5 + $0x28] sm:$0xff] }
 0x2d8   :  { %v615_v13 = vadd.f32 %v614_v63, %v613_v62  ;;  %v601_v14 = vadd.f32 %v1218_v53, %v600_v10  ;;  %v803_v62 = vld [vmem:[#allocation2 + $0x28] sm:$0xff] }
 0x2da   :  { %1219 = vtanh.f32 %v615_v13  ;;  %v605_v17 = vsel %vm604_vm1, %v1218_v53, %v601_v14 }
 0x2db   :  { %v610_v21 = vsel %vm607_vm2, %v609_v19, %v605_v17 }
 0x2e0   :  { %v1220_v18 = vpop.eup %1219 }
 0x2e1   :  { %v617_v20 = vsub.f32 %v1720_v34, %v1220_v18 }
 0x2e3   :  { %v618_v22 = vmul.f32 %v617_v20, %v610_v21 }
 0x2e5   :  { %v1744_v23 = vadd.f32 %v1220_v18, %v618_v22 }
 0x2e7   :  { %621 = vst.msk [vmem:[#allocation14 + $0x18] sm:$0xff] %vm154_vm0, %v1744_v23  ;;  %1149 = vmatmul.msk.f32.vlgmr.msrb.gmra.mxu0 %vm154_vm0, %v1744_v23  ;;  %1150 = vmatmul.msk.f32.vlgmr.msrb.gmra.mxu1 %vm154_vm0, %v1744_v23 }
 0x2e8   :  { %1151 = vmatmul.msk.f32.vlgmr.msrb.gmra.mxu2 %vm154_vm0, %v1744_v23  ;;  %911 = vmatpush.msrb.mxu0 %v1606_v6 }
 0x2e9   :  { %988 = vmatpush.msrb.mxu1 %v1589_v0  ;;  %1008 = vmatpush.msrb.mxu2 %v1591_v1  ;;  %v686_v0 = vld [vmem:[#allocation2 + $0x20] sm:$0xff] }
 0x2ea   :  { %912 = vmatpush.msrb.mxu0 %v1608_v7  ;;  %v708_v1 = vld [vmem:[#allocation5 + $0x20] sm:$0xff] }
 0x2eb   :  { %989 = vmatpush.msrb.mxu1 %v1593_v2  ;;  %1009 = vmatpush.msrb.mxu2 %v1597_v3 }
 0x2ec   :  { %913 = vmatpush.msrb.mxu0 %v1621_v11 }
 0x2ed   :  { %990 = vmatpush.msrb.mxu1 %v1599_v4  ;;  %1010 = vmatpush.msrb.mxu2 %v1601_v5 }
 0x2ee   :  { %914 = vmatpush.msrb.mxu0 %v1630_v12 }
 0x2ef   :  { %991 = vmatpush.msrb.mxu1 %v1610_v8  ;;  %1011 = vmatpush.msrb.mxu2 %v1612_v9 }
 0x364   :  { %v642_v24 = vpop.f32.mrf.mxu0  ;;  %v662_v25 = vpop.f32.mrf.mxu1 }
 0x365   :  { %v687_v26 = vadd.f32 %v686_v0, %v642_v24  ;;  %v709_v2 = vadd.f32 %v708_v1, %v662_v25 }
 0x367   :  { %v1152_v27 = vmul.f32 -1.442695, %v687_v26  ;;  %v1153_v3 = vmul.f32 -1.442695, %v709_v2  ;;  %v847_v2 = vld [vmem:[#allocation7 + $0x28] sm:$0xff] }
 0x369   :  { %1221 = vpow2.f32 %v1152_v27 }
 0x36a   :  { %1223 = vpow2.f32 %v1153_v3 }
 0x36b   :  { %v682_v37 = vpop.f32.mrf.mxu2 }
 0x36c   :  { %v683_v41 = vadd.f32 %v1668_v28, %v682_v37  ;;  %v942_v37 = vld [vmem:[#allocation5 + $0x30] sm:$0xff] }
 0x36f   :  { %v1222_v29 = vpop.eup %1221 }
 0x370   :  { %v1224_v4 = vpop.eup %1223  ;;  %v691_v30 = vadd.f32 1.0, %v1222_v29 }
 0x371   :  { %v713_v5 = vadd.f32 1.0, %v1224_v4 }
 0x372   :  { %1225 = vrcp.f32 %v691_v30  ;;  %v703_v34 = vand.u32 2147483648, %v691_v30  ;;  %v701_v36 = vand.u32 2147483647, %v691_v30  ;;  %vm697_vm4 = vweird.f32 %v691_v30 }
 0x373   :  { %1227 = vrcp.f32 %v713_v5  ;;  %v725_v49 = vand.u32 2147483648, %v713_v5  ;;  %vm719_vm8 = vweird.f32 %v713_v5  ;;  %v723_v50 = vand.u32 2147483647, %v713_v5 }
 0x374   :  { %v704_v40 = vor.u32 1.1754944e-38, %v703_v34  ;;  %vm702_vm6 = vcmp.eq.f32.partialorder %v701_v36, 8.507059e+37  ;;  %v920_v36 = vld [vmem:[#allocation2 + $0x30] sm:$0xff] }
 0x375   :  { %v726_v53 = vor.u32 1.1754944e-38, %v725_v49  ;;  %vm724_vm10 = vcmp.eq.f32.partialorder %v723_v50, 8.507059e+37 }
 0x378   :  { %v1226_v31 = vpop.eup %1225 }
 0x379   :  { %v1228_v8 = vpop.eup %1227  ;;  %v693_v32 = vmul.f32 %v1226_v31, %v691_v30  ;;  %vm698_vm3 = vweird.f32 %v1226_v31 }
 0x37a   :  { %v715_v33 = vmul.f32 %v1228_v8, %v713_v5  ;;  %vm699_vm5 = vmor %vm697_vm4, %vm698_vm3  ;;  %vm720_vm7 = vweird.f32 %v1228_v8 }
 0x37b   :  { %v694_v9 = vsub.f32 1.0, %v693_v32  ;;  %vm721_vm9 = vmor %vm719_vm8, %vm720_vm7 }
 0x37c   :  { %v716_v39 = vsub.f32 1.0, %v715_v33 }
 0x37d   :  { %v695_v35 = vmul.f32 %v1226_v31, %v694_v9 }
 0x37e   :  { %v717_v46 = vmul.f32 %v1228_v8, %v716_v39 }
 0x37f   :  { %v696_v38 = vadd.f32 %v1226_v31, %v695_v35 }
 0x380   :  { %v718_v48 = vadd.f32 %v1228_v8, %v717_v46 }
 0x381   :  { %v700_v42 = vsel %vm699_vm5, %v1226_v31, %v696_v38 }
 0x382   :  { %v705_v43 = vsel %vm702_vm6, %v704_v40, %v700_v42  ;;  %v722_v51 = vsel %vm721_vm9, %v1228_v8, %v718_v48 }
 0x383   :  { %v731_v45 = vmul.f32 %v705_v43, %v683_v41  ;;  %v727_v55 = vsel %vm724_vm10, %v726_v53, %v722_v51 }
 0x385   :  { %v732_v47 = vadd.f32 %v731_v45, %v730_v44 }
 0x387   :  { %1229 = vtanh.f32 %v732_v47 }
 0x38d   :  { %v1230_v52 = vpop.eup %1229 }
 0x38e   :  { %v734_v54 = vsub.f32 %v1744_v23, %v1230_v52 }
 0x390   :  { %v735_v56 = vmul.f32 %v734_v54, %v727_v55 }
 0x392   :  { %v736_v57 = vadd.f32 %v1230_v52, %v735_v56 }
 0x394   :  { %738 = vst.msk [vmem:[#allocation14 + $0x20] sm:$0xff] %vm154_vm0, %v736_v57  ;;  %1154 = vmatmul.msk.f32.vlgmr.msrb.gmra.mxu3 %vm154_vm0, %v736_v57  ;;  %1155 = vmatmul.msk.f32.vlgmr.msra.gmra.mxu0 %vm154_vm0, %v736_v57 }
 0x395   :  { %1156 = vmatmul.msk.f32.vlgmr.msra.gmra.mxu1 %vm154_vm0, %v736_v57  ;;  %1028 = vmatpush.msrb.mxu3 %v1606_v6 }
 0x397   :  { %1029 = vmatpush.msrb.mxu3 %v1608_v7 }
 0x399   :  { %1030 = vmatpush.msrb.mxu3 %v1621_v11 }
 0x39b   :  { %1031 = vmatpush.msrb.mxu3 %v1630_v12 }
 0x411   :  { %v779_v59 = vpop.f32.mrf.mxu0 }
 0x412   :  { %v826_v60 = vadd.f32 %v825_v58, %v779_v59  ;;  %v799_v22 = vpop.f32.mrf.mxu1 }
 0x413   :  { %v800_v24 = vadd.f32 %v1668_v28, %v799_v22 }
 0x414   :  { %v1158_v61 = vmul.f32 -1.442695, %v826_v60 }
 0x416   :  { %1231 = vpow2.f32 %v1158_v61 }
 0x417   :  { %v759_v63 = vpop.f32.mrf.mxu3 }
 0x418   :  { %v804_v10 = vadd.f32 %v803_v62, %v759_v63  ;;  %v964_v63 = vld [vmem:[#allocation7 + $0x30] sm:$0xff] }
 0x41a   :  { %v1157_v13 = vmul.f32 -1.442695, %v804_v10 }
 0x41c   :  { %1233 = vpow2.f32 %v1157_v13  ;;  %v1232_v14 = vpop.eup %1231 }
 0x41d   :  { %v830_v16 = vadd.f32 1.0, %v1232_v14 }
 0x41f   :  { %v842_v30 = vand.u32 2147483648, %v830_v16  ;;  %vm836_vm1 = vweird.f32 %v830_v16  ;;  %v840_v5 = vand.u32 2147483647, %v830_v16 }
 0x421   :  { %v843_v32 = vor.u32 1.1754944e-38, %v842_v30  ;;  %vm841_vm3 = vcmp.eq.f32.partialorder %v840_v5, 8.507059e+37 }
 0x422   :  { %v1234_v15 = vpop.eup %1233 }
 0x423   :  { %v808_v6 = vadd.f32 1.0, %v1234_v15 }
 0x425   :  { %1235 = vrcp.f32 %v808_v6  ;;  %v820_v19 = vand.u32 2147483648, %v808_v6  ;;  %v818_v21 = vand.u32 2147483647, %v808_v6  ;;  %vm814_vm12 = vweird.f32 %v808_v6 }
 0x426   :  { %1237 = vrcp.f32 %v830_v16 }
 0x427   :  { %v821_v1 = vor.u32 1.1754944e-38, %v820_v19  ;;  %vm819_vm14 = vcmp.eq.f32.partialorder %v818_v21, 8.507059e+37  ;;  %v1037_v21 = vld [vmem:[#allocation2 + $0x38] sm:$0xff] }
 0x42b   :  { %v1236_v7 = vpop.eup %1235 }
 0x42c   :  { %v1238_v11 = vpop.eup %1237  ;;  %v810_v17 = vmul.f32 %v1236_v7, %v808_v6  ;;  %vm815_vm11 = vweird.f32 %v1236_v7 }
 0x42d   :  { %v832_v18 = vmul.f32 %v1238_v11, %v830_v16  ;;  %vm816_vm13 = vmor %vm814_vm12, %vm815_vm11  ;;  %vm837_vm15 = vweird.f32 %v1238_v11 }
 0x42e   :  { %v811_v12 = vsub.f32 1.0, %v810_v17  ;;  %vm838_vm2 = vmor %vm836_vm1, %vm837_vm15 }
 0x42f   :  { %v833_v0 = vsub.f32 1.0, %v832_v18 }
 0x430   :  { %v812_v20 = vmul.f32 %v1236_v7, %v811_v12 }
 0x431   :  { %v834_v3 = vmul.f32 %v1238_v11, %v833_v0 }
 0x432   :  { %v813_v23 = vadd.f32 %v1236_v7, %v812_v20 }
 0x433   :  { %v835_v4 = vadd.f32 %v1238_v11, %v834_v3 }
 0x434   :  { %v817_v25 = vsel %vm816_vm13, %v1236_v7, %v813_v23 }
 0x435   :  { %v822_v26 = vsel %vm819_vm14, %v821_v1, %v817_v25  ;;  %v839_v31 = vsel %vm838_vm2, %v1238_v11, %v835_v4  ;;  %v1059_v1 = vld [vmem:[#allocation5 + $0x38] sm:$0xff] }
 0x436   :  { %v848_v27 = vmul.f32 %v822_v26, %v800_v24  ;;  %v844_v33 = vsel %vm841_vm3, %v843_v32, %v839_v31 }
 0x438   :  { %v849_v29 = vadd.f32 %v848_v27, %v847_v2 }
 0x43a   :  { %1239 = vtanh.f32 %v849_v29 }
 0x440   :  { %v1240_v8 = vpop.eup %1239 }
 0x441   :  { %v851_v9 = vsub.f32 %v736_v57, %v1240_v8 }
 0x443   :  { %v852_v34 = vmul.f32 %v851_v9, %v844_v33 }
 0x445   :  { %v853_v35 = vadd.f32 %v1240_v8, %v852_v34 }
 0x447   :  { %855 = vst.msk [vmem:[#allocation14 + $0x28] sm:$0xff] %vm154_vm0, %v853_v35  ;;  %1159 = vmatmul.msk.f32.vlgmr.msra.gmra.mxu2 %vm154_vm0, %v853_v35  ;;  %1160 = vmatmul.msk.f32.vlgmr.msra.gmra.mxu3 %vm154_vm0, %v853_v35 }
 0x448   :  { %1161 = vmatmul.msk.f32.vlgmr.msrb.gmra.mxu0 %vm154_vm0, %v853_v35 }
 0x4c5   :  { %v916_v56 = vpop.f32.mrf.mxu0 }
 0x4c6   :  { %v917_v60 = vadd.f32 %v1668_v28, %v916_v56 }
 0x4ca   :  { %v876_v38 = vpop.f32.mrf.mxu2  ;;  %v896_v39 = vpop.f32.mrf.mxu3 }
 0x4cb   :  { %v921_v40 = vadd.f32 %v920_v36, %v876_v38  ;;  %v943_v41 = vadd.f32 %v942_v37, %v896_v39 }
 0x4cd   :  { %v1162_v42 = vmul.f32 -1.442695, %v921_v40  ;;  %v1163_v43 = vmul.f32 -1.442695, %v943_v41  ;;  %v1081_v41 = vld [vmem:[#allocation7 + $0x38] sm:$0xff] }
 0x4cf   :  { %1241 = vpow2.f32 %v1162_v42 }
 0x4d0   :  { %1243 = vpow2.f32 %v1163_v43 }
 0x4d5   :  { %v1242_v44 = vpop.eup %1241 }
 0x4d6   :  { %v1244_v45 = vpop.eup %1243  ;;  %v925_v46 = vadd.f32 1.0, %v1242_v44 }
 0x4d7   :  { %v947_v47 = vadd.f32 1.0, %v1244_v45 }
 0x4d8   :  { %1245 = vrcp.f32 %v925_v46  ;;  %v937_v52 = vand.u32 2147483648, %v925_v46  ;;  %v935_v55 = vand.u32 2147483647, %v925_v46  ;;  %vm931_vm5 = vweird.f32 %v925_v46 }
 0x4d9   :  { %1247 = vrcp.f32 %v947_v47  ;;  %v959_v16 = vand.u32 2147483648, %v947_v47  ;;  %vm953_vm9 = vweird.f32 %v947_v47  ;;  %v957_v6 = vand.u32 2147483647, %v947_v47 }
 0x4da   :  { %v938_v58 = vor.u32 1.1754944e-38, %v937_v52  ;;  %vm936_vm7 = vcmp.eq.f32.partialorder %v935_v55, 8.507059e+37 }
 0x4db   :  { %v960_v17 = vor.u32 1.1754944e-38, %v959_v16  ;;  %vm958_vm11 = vcmp.eq.f32.partialorder %v957_v6, 8.507059e+37 }
 0x4de   :  { %v1246_v48 = vpop.eup %1245 }
 0x4df   :  { %v1248_v49 = vpop.eup %1247  ;;  %v927_v50 = vmul.f32 %v1246_v48, %v925_v46  ;;  %vm932_vm4 = vweird.f32 %v1246_v48 }
 0x4e0   :  { %v949_v53 = vmul.f32 %v1248_v49, %v947_v47  ;;  %vm933_vm6 = vmor %vm931_vm5, %vm932_vm4  ;;  %vm954_vm8 = vweird.f32 %v1248_v49 }
 0x4e1   :  { %v928_v51 = vsub.f32 1.0, %v927_v50  ;;  %vm955_vm10 = vmor %vm953_vm9, %vm954_vm8 }
 0x4e2   :  { %v950_v59 = vsub.f32 1.0, %v949_v53 }
 0x4e3   :  { %v929_v54 = vmul.f32 %v1246_v48, %v928_v51 }
 0x4e4   :  { %v951_v13 = vmul.f32 %v1248_v49, %v950_v59 }
 0x4e5   :  { %v930_v57 = vadd.f32 %v1246_v48, %v929_v54 }
 0x4e6   :  { %v952_v15 = vadd.f32 %v1248_v49, %v951_v13 }
 0x4e7   :  { %v934_v61 = vsel %vm933_vm6, %v1246_v48, %v930_v57 }
 0x4e8   :  { %v939_v62 = vsel %vm936_vm7, %v938_v58, %v934_v61  ;;  %v956_v7 = vsel %vm955_vm10, %v1248_v49, %v952_v15 }
 0x4e9   :  { %v965_v10 = vmul.f32 %v939_v62, %v917_v60  ;;  %v961_v18 = vsel %vm958_vm11, %v960_v17, %v956_v7 }
 0x4eb   :  { %v966_v14 = vadd.f32 %v965_v10, %v964_v63 }
 0x4ed   :  { %1249 = vtanh.f32 %v966_v14 }
 0x4f3   :  { %v1250_v11 = vpop.eup %1249 }
 0x4f4   :  { %v968_v12 = vsub.f32 %v853_v35, %v1250_v11 }
 0x4f6   :  { %v969_v19 = vmul.f32 %v968_v12, %v961_v18 }
 0x4f8   :  { %v970_v20 = vadd.f32 %v1250_v11, %v969_v19 }
 0x4fa   :  { %972 = vst.msk [vmem:[#allocation14 + $0x30] sm:$0xff] %vm154_vm0, %v970_v20  ;;  %1164 = vmatmul.msk.f32.vlgmr.msrb.gmra.mxu1 %vm154_vm0, %v970_v20  ;;  %1165 = vmatmul.msk.f32.vlgmr.msrb.gmra.mxu2 %vm154_vm0, %v970_v20 }
 0x4fb   :  { %1166 = vmatmul.msk.f32.vlgmr.msrb.gmra.mxu3 %vm154_vm0, %v970_v20 }
 0x577   :  { %v993_v22 = vpop.f32.mrf.mxu1 }
 0x578   :  { %v1038_v23 = vadd.f32 %v1037_v21, %v993_v22 }
 0x57a   :  { %v1167_v0 = vmul.f32 -1.442695, %v1038_v23 }
 0x57c   :  { %1251 = vpow2.f32 %v1167_v0 }
 0x57d   :  { %v1013_v24 = vpop.f32.mrf.mxu2 }
 0x57e   :  { %v1060_v25 = vadd.f32 %v1059_v1, %v1013_v24  ;;  %v1033_v33 = vpop.f32.mrf.mxu3 }
 0x57f   :  { %v1034_v38 = vadd.f32 %v1668_v28, %v1033_v33 }
 0x580   :  { %v1168_v26 = vmul.f32 -1.442695, %v1060_v25 }
 0x582   :  { %v1252_v2 = vpop.eup %1251  ;;  %1253 = vpow2.f32 %v1168_v26 }
 0x583   :  { %v1042_v27 = vadd.f32 1.0, %v1252_v2 }
 0x585   :  { %1255 = vrcp.f32 %v1042_v27  ;;  %v1054_v31 = vand.u32 2147483648, %v1042_v27  ;;  %v1052_v32 = vand.u32 2147483647, %v1042_v27  ;;  %vm1048_vm13 = vweird.f32 %v1042_v27 }
 0x587   :  { %v1055_v36 = vor.u32 1.1754944e-38, %v1054_v31  ;;  %vm1053_vm15 = vcmp.eq.f32.partialorder %v1052_v32, 8.507059e+37 }
 0x588   :  { %v1254_v3 = vpop.eup %1253 }
 0x589   :  { %v1064_v29 = vadd.f32 1.0, %v1254_v3 }
 0x58b   :  { %v1256_v4 = vpop.eup %1255  ;;  %1257 = vrcp.f32 %v1064_v29  ;;  %v1076_v46 = vand.u32 2147483648, %v1064_v29  ;;  %vm1070_vm2 = vweird.f32 %v1064_v29  ;;  %v1074_v47 = vand.u32 2147483647, %v1064_v29 }
 0x58c   :  { %v1044_v30 = vmul.f32 %v1256_v4, %v1042_v27  ;;  %vm1049_vm12 = vweird.f32 %v1256_v4 }
 0x58d   :  { %vm1050_vm14 = vmor %vm1048_vm13, %vm1049_vm12  ;;  %v1077_v50 = vor.u32 1.1754944e-38, %v1076_v46  ;;  %vm1075_vm4 = vcmp.eq.f32.partialorder %v1074_v47, 8.507059e+37 }
 0x58e   :  { %v1045_v5 = vsub.f32 1.0, %v1044_v30 }
 0x590   :  { %v1046_v8 = vmul.f32 %v1256_v4, %v1045_v5 }
 0x591   :  { %v1258_v9 = vpop.eup %1257 }
 0x592   :  { %v1066_v34 = vmul.f32 %v1258_v9, %v1064_v29  ;;  %v1047_v35 = vadd.f32 %v1256_v4, %v1046_v8  ;;  %vm1071_vm1 = vweird.f32 %v1258_v9 }
 0x593   :  { %vm1072_vm3 = vmor %vm1070_vm2, %vm1071_vm1 }
 0x594   :  { %v1067_v37 = vsub.f32 1.0, %v1066_v34  ;;  %v1051_v39 = vsel %vm1050_vm14, %v1256_v4, %v1047_v35 }
 0x595   :  { %v1056_v40 = vsel %vm1053_vm15, %v1055_v36, %v1051_v39 }
 0x596   :  { %v1082_v42 = vmul.f32 %v1056_v40, %v1034_v38  ;;  %v1068_v43 = vmul.f32 %v1258_v9, %v1067_v37 }
 0x598   :  { %v1083_v44 = vadd.f32 %v1082_v42, %v1081_v41  ;;  %v1069_v45 = vadd.f32 %v1258_v9, %v1068_v43 }
 0x59a   :  { %1259 = vtanh.f32 %v1083_v44  ;;  %v1073_v48 = vsel %vm1072_vm3, %v1258_v9, %v1069_v45 }
 0x59b   :  { %v1078_v28 = vsel %vm1075_vm4, %v1077_v50, %v1073_v48 }
 0x5a0   :  { %v1260_v49 = vpop.eup %1259 }
 0x5a1   :  { %v1085_v51 = vsub.f32 %v970_v20, %v1260_v49 }
 0x5a3   :  { %v1086_v52 = vmul.f32 %v1085_v51, %v1078_v28 }
 0x5a5   :  { %v1087_v53 = vadd.f32 %v1260_v49, %v1086_v52 }
 0x5a7   :  { %1089 = vst.msk [vmem:[#allocation14 + $0x38] sm:$0xff] %vm154_vm0, %v1087_v53 }
 0x5a8   :  { %1090 = vst.msk [vmem:[#allocation15] sm:$0xff] %vm154_vm0, %v1087_v53  ;;  %1103 = dma.vmem_to_hbm [thread:$0]  %s1096_s22, 1024, %s1098_s24, [#allocation4], %s1490_s17, %s1490_s17, %s1491_s18  }
 0x5a9   :  { %1114 = dma.vmem_to_hbm [thread:$0]  %s1110_s25, 128, %s1112_s28, [#allocation16]  }
 0x5aa   :  { %1485 = dma.done.wait [#allocation4], 1024  }
 0x5ab   :  { %1486 = vsyncadd [#allocation4], 4294966272 }
 0x5ac   :  { %1487 = dma.done.wait [#allocation16], 128  }
 0x5ad   :  { %1488 = vsyncadd [#allocation16], 4294967168 }
 0x5ae   :  { %1123 = vsyncpa [#allocation3], 1 }
 0x5af   :  { %1124 = vsyncpa [#allocation6], 1 }
 0x5b0   :  { %1125 = vsyncpa [#allocation9], 1 }
 0x5b1   :  { %1126 = vsyncpa [#allocation12], 1 }
 0x5b2   :  { %1127 = vsyncpa [#allocation4], 1 }
 0x5b3   :  { %1128 = vsyncpa [#allocation16], 1 }

</bundles_post_ra>
